<compile_context>
chip_gen: v7x
topology: tpu7x:2x2x1
jax: 0.10.0
libtpu: 0.0.40
codegen_flags: <defaults>
</compile_context>

<pallas_src>
import functools

import jax
import jax.numpy as jnp
from jax.experimental import pallas as pl
from jax.experimental.pallas import tpu as pltpu

HIDDEN_1 = 50
HIDDEN_2 = 20
OUT_DIM = 2
DROPOUT_P = 0.005


def _softplus(x):
    # Matches torch.nn.Softplus(beta=1, threshold=20): linear above threshold.
    return jnp.where(x > 20.0, x, jnp.log1p(jnp.exp(jnp.minimum(x, 20.0))))


def _uniform24(shape, seed_u32, col_off_u32, salt):
    """Stateless 24-bit uniform ints from (seed, layer salt, row, global col)."""
    rows = jax.lax.broadcasted_iota(jnp.int32, shape, 0).astype(jnp.uint32)
    cols = jax.lax.broadcasted_iota(jnp.int32, shape, 1).astype(jnp.uint32)
    h = seed_u32 + jnp.uint32(salt)
    h = h ^ (rows * jnp.uint32(0x9E3779B1))
    h = h ^ ((cols + col_off_u32) * jnp.uint32(0x85EBCA77))
    # murmur3 fmix32 finalizer
    h = h ^ (h >> 16)
    h = h * jnp.uint32(0x7FEB352D)
    h = h ^ (h >> 15)
    h = h * jnp.uint32(0x846CA68B)
    h = h ^ (h >> 16)
    # 24 random bits as a non-negative int32 (signed compare is always safe).
    return (h >> 8).astype(jnp.int32)


def _dropout(x, seed_u32, col_off_u32, salt, p):
    # Inverted dropout; integer-space keep test (no float convert / multiply).
    thresh = jnp.int32(int(round(p * (1 << 24))))
    keep = _uniform24(x.shape, seed_u32, col_off_u32, salt) >= thresh
    return jnp.where(keep, x * jnp.float32(1.0 / (1.0 - p)), jnp.float32(0.0))


def prob_mc_dropout_kernel(seed_ref, x_ref, w1_ref, b1_ref, w2_ref, b2_ref,
                           w3_ref, b3_ref, out_ref, *, dropout_p, training,
                           tile_b):
    seed = seed_ref[0].astype(jnp.uint32)
    col_off = (pl.program_id(0) * tile_b).astype(jnp.uint32)

    # linear1: (H1, F) . (TILE_B, F)^T -> (H1, TILE_B); softplus; dropout
    h = jax.lax.dot_general(
        w1_ref[...], x_ref[...],
        dimension_numbers=(((1,), (1,)), ((), ())),
        preferred_element_type=jnp.float32)
    h = _softplus(h + b1_ref[...])
    if training and dropout_p > 0.0:
        h = _dropout(h, seed, col_off, 0x1, dropout_p)

    # linear2: (H2, H1) @ (H1, TILE_B); softplus; dropout
    h = jnp.dot(w2_ref[...], h.astype(jnp.bfloat16),
                preferred_element_type=jnp.float32)
    h = _softplus(h + b2_ref[...])
    if training and dropout_p > 0.0:
        h = _dropout(h, seed, col_off, 0x2, dropout_p)

    # linear3: (2, H2) @ (H2, TILE_B) -> (2, TILE_B)
    o = jnp.dot(w3_ref[...], h.astype(jnp.bfloat16),
                preferred_element_type=jnp.float32) + b3_ref[...]

    # row 0 = loc, row 1 = softplus(.) + 1e-6 via a masked select
    # (no 1-wide slices / concatenate at the epilogue).
    row = jax.lax.broadcasted_iota(jnp.int32, o.shape, 0)
    out_ref[...] = jnp.where(row == 0, o, _softplus(o) + jnp.float32(1e-6))


def prob_mc_dropout_forward(params, x, seed, *, dropout_p=DROPOUT_P,
                            training=True, tile_b=512):
    """Returns (loc, scale) of the predictive Normal, each shaped (B,)."""
    b, f = x.shape
    # Lane-dense batch tile: multiple of 256 (full MXU passes on v6e, 2x128 on
    # v5e; >=256 rows amortizes per-grid-step overhead) but no larger than the
    # padded batch. Per-step VMEM stays tiny (<1 MiB), well under v7x's 64 MiB.
    tile_b = max(256, min(int(tile_b), pl.cdiv(b, 256) * 256))
    b_pad = pl.cdiv(b, tile_b) * tile_b
    grid = (b_pad // tile_b,)

    x_p = jnp.pad(x.astype(jnp.bfloat16), ((0, b_pad - b), (0, 0)))

    w1 = params["w1"].astype(jnp.bfloat16)
    w2 = params["w2"].astype(jnp.bfloat16)
    w3 = params["w3"].astype(jnp.bfloat16)
    b1 = params["b1"].astype(jnp.float32)
    b2 = params["b2"].astype(jnp.float32)
    b3 = params["b3"].astype(jnp.float32)
    h1, h2 = w1.shape[0], w2.shape[0]

    kern = functools.partial(prob_mc_dropout_kernel, dropout_p=dropout_p,
                             training=training, tile_b=tile_b)

    const = lambda i, s: (0, 0)       # weights / biases stay VMEM-resident
    batched = lambda i, s: (i, 0)     # x tiles walk the batch axis
    out_map = lambda i, s: (0, i)     # (2, TILE_B) lane-dense output tile

    out = pl.pallas_call(
        kern,
        out_shape=jax.ShapeDtypeStruct((OUT_DIM, b_pad), jnp.float32),
        grid_spec=pltpu.PrefetchScalarGridSpec(
            num_scalar_prefetch=1,
            grid=grid,
            in_specs=[
                pl.BlockSpec((tile_b, f), batched),   # x
                pl.BlockSpec((h1, f), const),         # w1
                pl.BlockSpec((h1, 1), const),         # b1
                pl.BlockSpec((h2, h1), const),        # w2
                pl.BlockSpec((h2, 1), const),         # b2
                pl.BlockSpec((OUT_DIM, h2), const),   # w3
                pl.BlockSpec((OUT_DIM, 1), const),    # b3
            ],
            out_specs=pl.BlockSpec((OUT_DIM, tile_b), out_map),
        ),
        compiler_params=pltpu.CompilerParams(
            dimension_semantics=("parallel",)),
    )(jnp.asarray([seed], jnp.int32), x_p, w1, b1, w2, b2, w3, b3)

    loc = out[0, :b]
    scale = out[1, :b]
    return loc, scale


def prob_mc_dropout_samples(params, x, seed, n_samples, **kwargs):
    """N stochastic MC-dropout passes folded into one pallas_call: the sample
    axis is just extra batch; the per-element hash decorrelates the masks."""
    b = x.shape[0]
    x_rep = jnp.tile(x, (n_samples, 1))
    loc, scale = prob_mc_dropout_forward(params, x_rep, seed, **kwargs)
    return loc.reshape(n_samples, b), scale.reshape(n_samples, b)


def init_params(key, input_size, hidden_size_1=HIDDEN_1,
                hidden_size_2=HIDDEN_2):
    """PyTorch-style (out, in) weights / (out, 1) biases, U(-1/sqrt(fan_in), +)."""
    def linear(k, fan_in, fan_out):
        kw, kb = jax.random.split(k)
        bound = 1.0 / (fan_in ** 0.5)
        w = jax.random.uniform(kw, (fan_out, fan_in), jnp.float32, -bound, bound)
        b = jax.random.uniform(kb, (fan_out, 1), jnp.float32, -bound, bound)
        return w, b

    k1, k2, k3 = jax.random.split(key, 3)
    w1, b1 = linear(k1, input_size, hidden_size_1)
    w2, b2 = linear(k2, hidden_size_1, hidden_size_2)
    w3, b3 = linear(k3, hidden_size_2, OUT_DIM)
    return {"w1": w1, "b1": b1, "w2": w2, "b2": b2, "w3": w3, "b3": b3}


if __name__ == "__main__":
    key = jax.random.PRNGKey(0)
    k_param, k_x = jax.random.split(key)

    batch = 8
    input_size = 32

    params = init_params(k_param, input_size)
    x = jax.random.normal(k_x, (batch, input_size), jnp.float32)

    loc, scale = prob_mc_dropout_forward(params, x, seed=1234)
    jax.block_until_ready((loc, scale))
    assert loc.shape == (batch,)
    assert scale.shape == (batch,)
    assert bool(jnp.all(scale > 0.0))
    assert bool(jnp.all(jnp.isfinite(loc)))

    # MC-dropout ensembling: 4 stochastic passes amortized into one launch.
    locs, scales = prob_mc_dropout_samples(params, x, seed=1234, n_samples=4)
    jax.block_until_ready((locs, scales))
    assert locs.shape == (4, batch)
    assert scales.shape == (4, batch)
    assert bool(jnp.all(scales > 0.0))

    print("KERNEL_OK")
</pallas_src>

<mosaic_0001>
module attributes {stable_mosaic.version = 11 : i64} {
  func.func @prob_mc_dropout_kernel(%arg0: i32, %arg1: memref<1xi32, #tpu.memory_space<smem>>, %arg2: memref<256x32xbf16, #tpu.memory_space<vmem>>, %arg3: memref<50x32xbf16, #tpu.memory_space<vmem>>, %arg4: memref<50x1xf32, #tpu.memory_space<vmem>>, %arg5: memref<20x50xbf16, #tpu.memory_space<vmem>>, %arg6: memref<20x1xf32, #tpu.memory_space<vmem>>, %arg7: memref<2x20xbf16, #tpu.memory_space<vmem>>, %arg8: memref<2x1xf32, #tpu.memory_space<vmem>>, %arg9: memref<2x256xf32, #tpu.memory_space<vmem>>) attributes {dimension_semantics = [#tpu.dimension_semantics<parallel>], iteration_bounds = array<i64: 1>, scalar_prefetch = 1 : i64, scratch_operands = 0 : i64, tpu.core_type = #tpu.core_type<tc>, window_params = [{transform_indices = @transform_0, window_bounds = array<i64: 256, 32>}, {pipeline_mode = #tpu.pipeline_mode<synchronous>, transform_indices = @transform_1, window_bounds = array<i64: 50, 32>}, {pipeline_mode = #tpu.pipeline_mode<synchronous>, transform_indices = @transform_2, window_bounds = array<i64: 50, 1>}, {pipeline_mode = #tpu.pipeline_mode<synchronous>, transform_indices = @transform_3, window_bounds = array<i64: 20, 50>}, {pipeline_mode = #tpu.pipeline_mode<synchronous>, transform_indices = @transform_4, window_bounds = array<i64: 20, 1>}, {pipeline_mode = #tpu.pipeline_mode<synchronous>, transform_indices = @transform_5, window_bounds = array<i64: 2, 20>}, {pipeline_mode = #tpu.pipeline_mode<synchronous>, transform_indices = @transform_6, window_bounds = array<i64: 2, 1>}, {transform_indices = @transform_7, window_bounds = array<i64: 2, 256>}]} {
    %c0 = arith.constant 0 : index
    %0 = memref.load %arg1[%c0] : memref<1xi32, #tpu.memory_space<smem>>
    %c256_i32 = arith.constant 256 : i32
    %1 = arith.muli %arg0, %c256_i32 : i32
    %c0_0 = arith.constant 0 : index
    %c0_1 = arith.constant 0 : index
    %2 = vector.load %arg3[%c0_0, %c0_1] : memref<50x32xbf16, #tpu.memory_space<vmem>>, vector<50x32xbf16>
    %c0_2 = arith.constant 0 : index
    %c0_3 = arith.constant 0 : index
    %3 = vector.load %arg2[%c0_2, %c0_3] : memref<256x32xbf16, #tpu.memory_space<vmem>>, vector<256x32xbf16>
    %cst = arith.constant dense<0.000000e+00> : vector<50x256xf32>
    %4 = tpu.matmul %2, %3, %cst {dimension_numbers = #tpu.dot_dimension_numbers<[1], [1], [0], [0], [0, 0, 1, 0], [], []>} : vector<50x32xbf16>, vector<256x32xbf16>, vector<50x256xf32> -> vector<50x256xf32>
    %c0_4 = arith.constant 0 : index
    %c0_5 = arith.constant 0 : index
    %5 = vector.load %arg4[%c0_4, %c0_5] : memref<50x1xf32, #tpu.memory_space<vmem>>, vector<50x1xf32>
    %6 = vector.broadcast %5 : vector<50x1xf32> to vector<50x256xf32>
    %7 = arith.addf %4, %6 : vector<50x256xf32>
    %cst_6 = arith.constant 2.000000e+01 : f32
    %8 = vector.broadcast %cst_6 : f32 to vector<50x256xf32>
    %9 = arith.cmpf ogt, %7, %8 : vector<50x256xf32>
    %cst_7 = arith.constant 2.000000e+01 : f32
    %10 = vector.broadcast %cst_7 : f32 to vector<50x256xf32>
    %11 = arith.minimumf %7, %10 : vector<50x256xf32>
    %12 = math.exp %11 : vector<50x256xf32>
    %13 = math.log1p %12 : vector<50x256xf32>
    %14 = arith.select %9, %7, %13 : vector<50x256xi1>, vector<50x256xf32>
    %15 = tpu.iota {dimensions = array<i32: 0>} : vector<50x256xi32>
    %16 = tpu.iota {dimensions = array<i32: 1>} : vector<50x256xi32>
    %c1_i32 = arith.constant 1 : i32
    %17 = arith.addi %0, %c1_i32 : i32
    %c-1640531535_i32 = arith.constant -1640531535 : i32
    %18 = vector.broadcast %c-1640531535_i32 : i32 to vector<50x256xi32>
    %19 = arith.muli %15, %18 : vector<50x256xi32>
    %20 = vector.broadcast %17 : i32 to vector<50x256xi32>
    %21 = arith.xori %20, %19 : vector<50x256xi32>
    %22 = vector.broadcast %1 : i32 to vector<50x256xi32>
    %23 = arith.addi %16, %22 : vector<50x256xi32>
    %c-2048144777_i32 = arith.constant -2048144777 : i32
    %24 = vector.broadcast %c-2048144777_i32 : i32 to vector<50x256xi32>
    %25 = arith.muli %23, %24 : vector<50x256xi32>
    %26 = arith.xori %21, %25 : vector<50x256xi32>
    %c16_i32 = arith.constant 16 : i32
    %27 = vector.broadcast %c16_i32 : i32 to vector<50x256xi32>
    %28 = arith.shrui %26, %27 : vector<50x256xi32>
    %29 = arith.xori %26, %28 : vector<50x256xi32>
    %c2146121005_i32 = arith.constant 2146121005 : i32
    %30 = vector.broadcast %c2146121005_i32 : i32 to vector<50x256xi32>
    %31 = arith.muli %29, %30 : vector<50x256xi32>
    %c15_i32 = arith.constant 15 : i32
    %32 = vector.broadcast %c15_i32 : i32 to vector<50x256xi32>
    %33 = arith.shrui %31, %32 : vector<50x256xi32>
    %34 = arith.xori %31, %33 : vector<50x256xi32>
    %c-2073254261_i32 = arith.constant -2073254261 : i32
    %35 = vector.broadcast %c-2073254261_i32 : i32 to vector<50x256xi32>
    %36 = arith.muli %34, %35 : vector<50x256xi32>
    %c16_i32_8 = arith.constant 16 : i32
    %37 = vector.broadcast %c16_i32_8 : i32 to vector<50x256xi32>
    %38 = arith.shrui %36, %37 : vector<50x256xi32>
    %39 = arith.xori %36, %38 : vector<50x256xi32>
    %c8_i32 = arith.constant 8 : i32
    %40 = vector.broadcast %c8_i32 : i32 to vector<50x256xi32>
    %41 = arith.shrui %39, %40 : vector<50x256xi32>
    %c83886_i32 = arith.constant 83886 : i32
    %42 = vector.broadcast %c83886_i32 : i32 to vector<50x256xi32>
    %43 = arith.cmpi sge, %41, %42 : vector<50x256xi32>
    %cst_9 = arith.constant 1.00502515 : f32
    %44 = vector.broadcast %cst_9 : f32 to vector<50x256xf32>
    %45 = arith.mulf %14, %44 : vector<50x256xf32>
    %cst_10 = arith.constant 0.000000e+00 : f32
    %46 = vector.broadcast %cst_10 : f32 to vector<50x256xf32>
    %47 = arith.select %43, %45, %46 : vector<50x256xi1>, vector<50x256xf32>
    %c0_11 = arith.constant 0 : index
    %c0_12 = arith.constant 0 : index
    %48 = vector.load %arg5[%c0_11, %c0_12] : memref<20x50xbf16, #tpu.memory_space<vmem>>, vector<20x50xbf16>
    %49 = arith.truncf %47 : vector<50x256xf32> to vector<50x256xbf16>
    %cst_13 = arith.constant dense<0.000000e+00> : vector<20x256xf32>
    %50 = tpu.matmul %48, %49, %cst_13 {dimension_numbers = #tpu.dot_dimension_numbers<[1], [0], [0], [1], [0, 0, 1, 1], [], []>} : vector<20x50xbf16>, vector<50x256xbf16>, vector<20x256xf32> -> vector<20x256xf32>
    %c0_14 = arith.constant 0 : index
    %c0_15 = arith.constant 0 : index
    %51 = vector.load %arg6[%c0_14, %c0_15] : memref<20x1xf32, #tpu.memory_space<vmem>>, vector<20x1xf32>
    %52 = vector.broadcast %51 : vector<20x1xf32> to vector<20x256xf32>
    %53 = arith.addf %50, %52 : vector<20x256xf32>
    %cst_16 = arith.constant 2.000000e+01 : f32
    %54 = vector.broadcast %cst_16 : f32 to vector<20x256xf32>
    %55 = arith.cmpf ogt, %53, %54 : vector<20x256xf32>
    %cst_17 = arith.constant 2.000000e+01 : f32
    %56 = vector.broadcast %cst_17 : f32 to vector<20x256xf32>
    %57 = arith.minimumf %53, %56 : vector<20x256xf32>
    %58 = math.exp %57 : vector<20x256xf32>
    %59 = math.log1p %58 : vector<20x256xf32>
    %60 = arith.select %55, %53, %59 : vector<20x256xi1>, vector<20x256xf32>
    %61 = tpu.iota {dimensions = array<i32: 0>} : vector<20x256xi32>
    %62 = tpu.iota {dimensions = array<i32: 1>} : vector<20x256xi32>
    %c2_i32 = arith.constant 2 : i32
    %63 = arith.addi %0, %c2_i32 : i32
    %c-1640531535_i32_18 = arith.constant -1640531535 : i32
    %64 = vector.broadcast %c-1640531535_i32_18 : i32 to vector<20x256xi32>
    %65 = arith.muli %61, %64 : vector<20x256xi32>
    %66 = vector.broadcast %63 : i32 to vector<20x256xi32>
    %67 = arith.xori %66, %65 : vector<20x256xi32>
    %68 = vector.broadcast %1 : i32 to vector<20x256xi32>
    %69 = arith.addi %62, %68 : vector<20x256xi32>
    %c-2048144777_i32_19 = arith.constant -2048144777 : i32
    %70 = vector.broadcast %c-2048144777_i32_19 : i32 to vector<20x256xi32>
    %71 = arith.muli %69, %70 : vector<20x256xi32>
    %72 = arith.xori %67, %71 : vector<20x256xi32>
    %c16_i32_20 = arith.constant 16 : i32
    %73 = vector.broadcast %c16_i32_20 : i32 to vector<20x256xi32>
    %74 = arith.shrui %72, %73 : vector<20x256xi32>
    %75 = arith.xori %72, %74 : vector<20x256xi32>
    %c2146121005_i32_21 = arith.constant 2146121005 : i32
    %76 = vector.broadcast %c2146121005_i32_21 : i32 to vector<20x256xi32>
    %77 = arith.muli %75, %76 : vector<20x256xi32>
    %c15_i32_22 = arith.constant 15 : i32
    %78 = vector.broadcast %c15_i32_22 : i32 to vector<20x256xi32>
    %79 = arith.shrui %77, %78 : vector<20x256xi32>
    %80 = arith.xori %77, %79 : vector<20x256xi32>
    %c-2073254261_i32_23 = arith.constant -2073254261 : i32
    %81 = vector.broadcast %c-2073254261_i32_23 : i32 to vector<20x256xi32>
    %82 = arith.muli %80, %81 : vector<20x256xi32>
    %c16_i32_24 = arith.constant 16 : i32
    %83 = vector.broadcast %c16_i32_24 : i32 to vector<20x256xi32>
    %84 = arith.shrui %82, %83 : vector<20x256xi32>
    %85 = arith.xori %82, %84 : vector<20x256xi32>
    %c8_i32_25 = arith.constant 8 : i32
    %86 = vector.broadcast %c8_i32_25 : i32 to vector<20x256xi32>
    %87 = arith.shrui %85, %86 : vector<20x256xi32>
    %c83886_i32_26 = arith.constant 83886 : i32
    %88 = vector.broadcast %c83886_i32_26 : i32 to vector<20x256xi32>
    %89 = arith.cmpi sge, %87, %88 : vector<20x256xi32>
    %cst_27 = arith.constant 1.00502515 : f32
    %90 = vector.broadcast %cst_27 : f32 to vector<20x256xf32>
    %91 = arith.mulf %60, %90 : vector<20x256xf32>
    %cst_28 = arith.constant 0.000000e+00 : f32
    %92 = vector.broadcast %cst_28 : f32 to vector<20x256xf32>
    %93 = arith.select %89, %91, %92 : vector<20x256xi1>, vector<20x256xf32>
    %c0_29 = arith.constant 0 : index
    %c0_30 = arith.constant 0 : index
    %94 = vector.load %arg7[%c0_29, %c0_30] : memref<2x20xbf16, #tpu.memory_space<vmem>>, vector<2x20xbf16>
    %95 = arith.truncf %93 : vector<20x256xf32> to vector<20x256xbf16>
    %cst_31 = arith.constant dense<0.000000e+00> : vector<2x256xf32>
    %96 = tpu.matmul %94, %95, %cst_31 {dimension_numbers = #tpu.dot_dimension_numbers<[1], [0], [0], [1], [0, 0, 1, 1], [], []>} : vector<2x20xbf16>, vector<20x256xbf16>, vector<2x256xf32> -> vector<2x256xf32>
    %c0_32 = arith.constant 0 : index
    %c0_33 = arith.constant 0 : index
    %97 = vector.load %arg8[%c0_32, %c0_33] : memref<2x1xf32, #tpu.memory_space<vmem>>, vector<2x1xf32>
    %98 = vector.broadcast %97 : vector<2x1xf32> to vector<2x256xf32>
    %99 = arith.addf %96, %98 : vector<2x256xf32>
    %100 = tpu.iota {dimensions = array<i32: 0>} : vector<2x256xi32>
    %c0_i32 = arith.constant 0 : i32
    %101 = vector.broadcast %c0_i32 : i32 to vector<2x256xi32>
    %102 = arith.cmpi eq, %100, %101 : vector<2x256xi32>
    %cst_34 = arith.constant 2.000000e+01 : f32
    %103 = vector.broadcast %cst_34 : f32 to vector<2x256xf32>
    %104 = arith.cmpf ogt, %99, %103 : vector<2x256xf32>
    %cst_35 = arith.constant 2.000000e+01 : f32
    %105 = vector.broadcast %cst_35 : f32 to vector<2x256xf32>
    %106 = arith.minimumf %99, %105 : vector<2x256xf32>
    %107 = math.exp %106 : vector<2x256xf32>
    %108 = math.log1p %107 : vector<2x256xf32>
    %109 = arith.select %104, %99, %108 : vector<2x256xi1>, vector<2x256xf32>
    %cst_36 = arith.constant 9.99999997E-7 : f32
    %110 = vector.broadcast %cst_36 : f32 to vector<2x256xf32>
    %111 = arith.addf %109, %110 : vector<2x256xf32>
    %112 = arith.select %102, %99, %111 : vector<2x256xi1>, vector<2x256xf32>
    %c0_37 = arith.constant 0 : index
    %c0_38 = arith.constant 0 : index
    %113 = vector.load %arg9[%c0_37, %c0_38] : memref<2x256xf32, #tpu.memory_space<vmem>>, vector<2x256xf32>
    tpu.vector_store %arg9[%c0_37, %c0_38], %112 {strides = array<i32>} : memref<2x256xf32, #tpu.memory_space<vmem>>, vector<2x256xf32>,
    return
  }
  func.func @transform_0(%arg0: i32, %arg1: memref<1xi32, #tpu.memory_space<smem>>) -> (i32, i32) {
    %c0_i32 = arith.constant 0 : i32
    %c0_i32_0 = arith.constant 0 : i32
    return %arg0, %c0_i32 : i32, i32
  }
  func.func @transform_1(%arg0: i32, %arg1: memref<1xi32, #tpu.memory_space<smem>>) -> (i32, i32) {
    %c0_i32 = arith.constant 0 : i32
    %c0_i32_0 = arith.constant 0 : i32
    %c0_i32_1 = arith.constant 0 : i32
    return %c0_i32, %c0_i32_0 : i32, i32
  }
  func.func @transform_2(%arg0: i32, %arg1: memref<1xi32, #tpu.memory_space<smem>>) -> (i32, i32) {
    %c0_i32 = arith.constant 0 : i32
    %c0_i32_0 = arith.constant 0 : i32
    %c0_i32_1 = arith.constant 0 : i32
    return %c0_i32, %c0_i32_0 : i32, i32
  }
  func.func @transform_3(%arg0: i32, %arg1: memref<1xi32, #tpu.memory_space<smem>>) -> (i32, i32) {
    %c0_i32 = arith.constant 0 : i32
    %c0_i32_0 = arith.constant 0 : i32
    %c0_i32_1 = arith.constant 0 : i32
    return %c0_i32, %c0_i32_0 : i32, i32
  }
  func.func @transform_4(%arg0: i32, %arg1: memref<1xi32, #tpu.memory_space<smem>>) -> (i32, i32) {
    %c0_i32 = arith.constant 0 : i32
    %c0_i32_0 = arith.constant 0 : i32
    %c0_i32_1 = arith.constant 0 : i32
    return %c0_i32, %c0_i32_0 : i32, i32
  }
  func.func @transform_5(%arg0: i32, %arg1: memref<1xi32, #tpu.memory_space<smem>>) -> (i32, i32) {
    %c0_i32 = arith.constant 0 : i32
    %c0_i32_0 = arith.constant 0 : i32
    %c0_i32_1 = arith.constant 0 : i32
    return %c0_i32, %c0_i32_0 : i32, i32
  }
  func.func @transform_6(%arg0: i32, %arg1: memref<1xi32, #tpu.memory_space<smem>>) -> (i32, i32) {
    %c0_i32 = arith.constant 0 : i32
    %c0_i32_0 = arith.constant 0 : i32
    %c0_i32_1 = arith.constant 0 : i32
    return %c0_i32, %c0_i32_0 : i32, i32
  }
  func.func @transform_7(%arg0: i32, %arg1: memref<1xi32, #tpu.memory_space<smem>>) -> (i32, i32) {
    %c0_i32 = arith.constant 0 : i32
    %c0_i32_0 = arith.constant 0 : i32
    return %c0_i32, %arg0 : i32, i32
  }
}

</mosaic_0001>

<bundles_post_ra>
// kernel: tpu_custom_call.1
= control target key start
LH: loop header
LB: loop body
LE: loop exit
PB: predicated region body
PF: predicated region fallthrough
CT: control target
= control target key end

     0   :  { %vm211_vm0 = vcmask 261120   ;;  %v2173_v3 = vmov 0   ;;  %s2161_s0 = inlined_call_operand.<no memory space> [shape: s32[1], index: 0, kind: input, shape index: {}]   ;;  %s2162_s1 = inlined_call_operand.vmem [shape: bf16[256,32], index: 1, kind: input, shape index: {}]   ;;  %s2163_s2 = inlined_call_operand.vmem [shape: bf16[50,32], index: 2, kind: input, shape index: {}]   ;;  %s2164_s3 = inlined_call_operand.vmem [shape: f32[50,1], index: 3, kind: input, shape index: {}]   ;;  %s2165_s4 = inlined_call_operand.vmem [shape: bf16[20,50], index: 4, kind: input, shape index: {}]   ;;  %s2166_s5 = inlined_call_operand.vmem [shape: f32[20,1], index: 5, kind: input, shape index: {}]   ;;  %s2167_s6 = inlined_call_operand.vmem [shape: bf16[2,20], index: 6, kind: input, shape index: {}]   ;;  %s2168_s7 = inlined_call_operand.vmem [shape: f32[2,1], index: 7, kind: input, shape index: {}]   ;;  %s2169_s8 = inlined_call_operand.hbm [shape: f32[2,256], index: 8, kind: output, shape index: {}]  }
   0x1   :  { %v1236_v0 = vld [vmem:[%s2162_s1 + $0x40] sm:$0xff]   ;;  %v1238_v2 = vld [vmem:[%s2162_s1 + $0x48] sm:$0xff]   ;;  %1234 = vset.pattern.permute.xlu0 %v2173_v3  ;;  %1235 = vset.pattern.permute.xlu1 %v2173_v3  ;;  %v1240_v7 = vld [vmem:[%s2162_s1 + $0x50] sm:$0xff]  }
   0x2   :  { %v1237_v1 = vld [vmem:[%s2162_s1] sm:$0xff]   ;;  %1224 = vmatprep.subr.msk.bf16.mxu0 %vm211_vm0, %v1236_v0  ;;  %836 = vmatprep.mubr.bf16.mxu1 %v2173_v3  ;;  %v1239_v5 = vld [vmem:[%s2162_s1 + $0x8] sm:$0xff]   ;;  %v1241_v8 = vld [vmem:[%s2162_s1 + $0x10] sm:$0xff]  }
   0x3   :  { %v225_v4 = vsel %vm211_vm0, %v1237_v1, 0  ;;  %v228_v6 = vsel %vm211_vm0, %v1239_v5, 0  ;;  %v1252_v9 = vld [vmem:[%s2163_s2] sm:$0xff]   ;;  %v231_v10 = vsel %vm211_vm0, %v1241_v8, 0  ;;  %v1242_v11 = vld [vmem:[%s2162_s1 + $0x58] sm:$0xff]   ;;  %v73_v13 = vld [vmem:[%s2164_s3 + $0x10] sm:$0xff] }
   0x4   :  { %1201 = vmatpush3.bf16.xpose.msra.mxu0 %v225_v4  ;;  %1216 = vmatprep.mubr.msk.bf16.mxu0 %vm211_vm0, %v1252_v9  ;;  %v71_v12 = vld [vmem:[%s2164_s3] sm:$0xff]  ;;  %v1243_v14 = vld [vmem:[%s2162_s1 + $0x18] sm:$0xff]   ;;  %v72_v15 = vld [vmem:[%s2164_s3 + $0x8] sm:$0xff] }
   0x5   :  { %1225 = vmatprep.subr.msk.bf16.mxu0 %vm211_vm0, %v1238_v2  ;;  %80 = vperm.xlu0 %1234, %v71_v12   ;;  %v74_v16 = vld [vmem:[%s2164_s3 + $0x18] sm:$0xff] }
   0x6   :  { %90 = vperm.xlu1 %1235, %v73_v13  }
   0x9   :  { %85 = vperm.xlu0 %1234, %v72_v15  }
   0xc   :  { %1203 = vmatpush3.bf16.xpose.msra.mxu0 %v228_v6 }
   0xd   :  { %1226 = vmatprep.subr.msk.bf16.mxu0 %vm211_vm0, %v1240_v7 }
  0x14   :  { %1205 = vmatpush3.bf16.xpose.msra.mxu0 %v231_v10 }
  0x15   :  { %1227 = vmatprep.subr.msk.bf16.mxu0 %vm211_vm0, %v1242_v11 }
  0x16   :  { %14 = vsyncpa [#allocation5], 0  ;;  %v234_v17 = vsel %vm211_vm0, %v1243_v14, 0  ;;  %v1244_v18 = vld [vmem:[%s2162_s1 + $0x60] sm:$0xff]   ;;  %95 = vperm.xlu1 %1235, %v74_v16   ;;  %v76_v20 = vld [vmem:[%s2164_s3 + $0x28] sm:$0xff]  ;;  %v539_v40 = vlaneseq  ;;  %s550_s21 = sadd.s32 1, %s2161_s0 }
  0x17   :  { %v75_v19 = vld [vmem:[%s2164_s3 + $0x20] sm:$0xff]  ;;  %v77_v22 = vld [vmem:[%s2164_s3 + $0x30] sm:$0x3]  ;;  %v1246_v25 = vld [vmem:[%s2162_s1 + $0x68] sm:$0xff]   ;;  %v1546_v46 = vstv %s550_s21  ;;  %s939_s3 = sadd.s32 2, %s2161_s0 }
  0x18   :  { %100 = vperm.xlu0 %1234, %v75_v19   ;;  %v1245_v21 = vld [vmem:[%s2162_s1 + $0x20] sm:$0xff]   ;;  %v765_v26 = vld [vmem:[%s2166_s5 + $0x8] sm:$0xff]  ;;  %v766_v27 = vld [vmem:[%s2166_s5 + $0x10] sm:$0xf]  ;;  %v1537_v41 = vshrl.u32 %v539_v40, 7  ;;  %v548_v42 = vand.u32 127, %v539_v40 }
  0x19   :  { %v764_v23 = vld [vmem:[%s2166_s5] sm:$0xff]  ;;  %v237_v24 = vsel %vm211_vm0, %v1245_v21, 0  ;;  %v1247_v28 = vld [vmem:[%s2162_s1 + $0x28] sm:$0xff]   ;;  %v1248_v31 = vld [vmem:[%s2162_s1 + $0x70] sm:$0xff]  }
  0x1a   :  { %105 = vperm.xlu1 %1235, %v76_v20   ;;  %v1027_v29 = vld [vmem:[%s2168_s7] sm:$0x3]  ;;  %v240_v30 = vsel %vm211_vm0, %v1247_v28, 0  ;;  %v1249_v32 = vld [vmem:[%s2162_s1 + $0x30] sm:$0xff]   ;;  %v1250_v34 = vld [vmem:[%s2162_s1 + $0x78] sm:$0xff]   ;;  %2184 = vst [vmem:[#allocation7_spill] sm:$0xff] %v1537_v41 }
  0x1b   :  { %v243_v33 = vsel %vm211_vm0, %v1249_v32, 0  ;;  %v1251_v35 = vld [vmem:[%s2162_s1 + $0x38] sm:$0xff]   ;;  %v1253_v37 = vld [vmem:[%s2163_s2 + $0x8] sm:$0xff]   ;;  %v1254_v38 = vld [vmem:[%s2163_s2 + $0x10] sm:$0xff]   ;;  %v1540_v43 = vadd.s32 8, %v1537_v41  ;;  %v549_v44 = vadd.s32 128, %v548_v42 }
  0x1c   :  { %1207 = vmatpush3.bf16.xpose.msra.mxu0 %v234_v17  ;;  %110 = vperm.xlu0 %1234, %v77_v22   ;;  %v246_v36 = vsel %vm211_vm0, %v1251_v35, 0  ;;  %v1255_v39 = vld [vmem:[%s2163_s2 + $0x18] ss:$0 sps:$4 sm:$0x11]   ;;  %v2172_v45 = vmul.u32 2654435761, %v1537_v41 }
  0x1d   :  { %1228 = vmatprep.subr.msk.bf16.mxu0 %vm211_vm0, %v1244_v18  ;;  %2185 = vst [vmem:[#allocation8_spill] sm:$0xff] %v1540_v43  ;;  %v2171_v47 = vmul.u32 2654435761, %v1540_v43  ;;  %v1550_v48 = vadd.s32 16, %v1537_v41  ;;  %v1552_v49 = vmul.u32 2246822519, %v549_v44 }
  0x1e   :  { %769 = vperm.xlu1 %1235, %v764_v23   ;;  %v559_v50 = vxor.u32 %v1546_v46, %v2172_v45  ;;  %v543_v52 = vadd.s32 24, %v1537_v41  ;;  %v1561_v53 = vmul.u32 2246822519, %v548_v42  ;;  %v546_v59 = vadd.s32 48, %v1537_v41 }
  0x1f   :  { %2186 = vst [vmem:[#allocation9_spill] sm:$0xff] %v1550_v48  ;;  %2187 = vst [vmem:[#allocation10_spill] sm:$0xff] %v1552_v49  ;;  %v560_v51 = vxor.u32 %v1546_v46, %v2171_v47  ;;  %v2170_v54 = vmul.u32 2654435761, %v1550_v48  ;;  %v544_v35 = vadd.s32 32, %v1537_v41 }
  0x20   :  { %774 = vperm.xlu0 %1234, %v765_v26   ;;  %2188 = vst [vmem:[#allocation11_spill] sm:$0xff] %v1561_v53  ;;  %v572_v55 = vxor.u32 %v1552_v49, %v559_v50  ;;  %v554_v57 = vmul.u32 2654435761, %v543_v52  ;;  %v571_v58 = vxor.u32 %v1561_v53, %v559_v50  ;;  %v557_v2 = vmul.u32 2654435761, %v546_v59 }
  0x21   :  { %v574_v56 = vxor.u32 %v1552_v49, %v560_v51  ;;  %v561_v60 = vxor.u32 %v1546_v46, %v2170_v54  ;;  %v573_v62 = vxor.u32 %v1561_v53, %v560_v51  ;;  %v545_v50 = vadd.s32 40, %v1537_v41 }
  0x22   :  { %779 = vperm.xlu1 %1235, %v766_v27   ;;  %v586_v61 = vshrl.u32 %v572_v55, 16  ;;  %v562_v0 = vxor.u32 %v1546_v46, %v554_v57  ;;  %v585_v1 = vshrl.u32 %v571_v58, 16  ;;  %v565_v10 = vxor.u32 %v1546_v46, %v557_v2 }
  0x23   :  { %v588_v63 = vshrl.u32 %v574_v56, 16  ;;  %v576_v4 = vxor.u32 %v1552_v49, %v561_v60  ;;  %v587_v6 = vshrl.u32 %v573_v62, 16  ;;  %v575_v28 = vxor.u32 %v1561_v53, %v561_v60 }
  0x24   :  { %1209 = vmatpush3.bf16.xpose.msra.mxu0 %v237_v24  ;;  %1030 = vperm.xlu0 %1234, %v1027_v29   ;;  %v600_v5 = vxor.u32 %v586_v61, %v572_v55  ;;  %v578_v8 = vxor.u32 %v1552_v49, %v562_v0  ;;  %v584_v17 = vxor.u32 %v1552_v49, %v565_v10  ;;  %v555_v55 = vmul.u32 2654435761, %v544_v35 }
  0x25   :  { %1229 = vmatprep.subr.msk.bf16.mxu0 %vm211_vm0, %v1246_v25  ;;  %v602_v7 = vxor.u32 %v588_v63, %v574_v56  ;;  %v590_v11 = vshrl.u32 %v576_v4, 16  ;;  %v601_v13 = vxor.u32 %v587_v6, %v573_v62  ;;  %v556_v62 = vmul.u32 2654435761, %v545_v50 }
  0x26   :  { %v614_v12 = vmul.u32 2146121005, %v600_v5  ;;  %v592_v15 = vshrl.u32 %v578_v8, 16  ;;  %v598_v24 = vshrl.u32 %v584_v17, 16 }
  0x27   :  { %v616_v14 = vmul.u32 2146121005, %v602_v7  ;;  %v604_v18 = vxor.u32 %v590_v11, %v576_v4  ;;  %v615_v20 = vmul.u32 2146121005, %v601_v13  ;;  %v563_v4 = vxor.u32 %v1546_v46, %v555_v55 }
  0x28   :  { %v628_v19 = vshrl.u32 %v614_v12, 15  ;;  %v606_v22 = vxor.u32 %v592_v15, %v578_v8  ;;  %v564_v13 = vxor.u32 %v1546_v46, %v556_v62 }
  0x29   :  { %v630_v21 = vshrl.u32 %v616_v14, 15  ;;  %v618_v25 = vmul.u32 2146121005, %v604_v18  ;;  %v629_v27 = vshrl.u32 %v615_v20, 15  ;;  %v580_v18 = vxor.u32 %v1552_v49, %v563_v4 }
  0x2a   :  { %v642_v26 = vxor.u32 %v628_v19, %v614_v12  ;;  %v583_v12 = vxor.u32 %v1561_v53, %v565_v10 }
  0x2b   :  { %v644_v29 = vxor.u32 %v630_v21, %v616_v14 }
  0x2c   :  { %1211 = vmatpush3.bf16.xpose.msra.mxu0 %v240_v30  ;;  %v620_v30 = vmul.u32 2146121005, %v606_v22 }
  0x2d   :  { %1230 = vmatprep.subr.msk.bf16.mxu0 %vm211_vm0, %v1248_v31  ;;  %v577_v31 = vxor.u32 %v1561_v53, %v562_v0 }
  0x2e   :  { %v634_v40 = vshrl.u32 %v620_v30, 15 }
  0x2f   :  { %v591_v42 = vshrl.u32 %v577_v31, 16 }
  0x30   :  { %v648_v60 = vxor.u32 %v634_v40, %v620_v30 }
  0x31   :  { %v605_v61 = vxor.u32 %v591_v42, %v577_v31  ;;  %v582_v31 = vxor.u32 %v1552_v49, %v564_v13 }
  0x33   :  { %v619_v11 = vmul.u32 2146121005, %v605_v61 }
  0x34   :  { %1213 = vmatpush3.bf16.xpose.msra.mxu0 %v243_v33  ;;  %v612_v33 = vxor.u32 %v598_v24, %v584_v17 }
  0x35   :  { %1231 = vmatprep.subr.msk.bf16.mxu0 %vm211_vm0, %v1250_v34  ;;  %v632_v34 = vshrl.u32 %v618_v25, 15 }
  0x36   :  { %v626_v51 = vmul.u32 2146121005, %v612_v33 }
  0x37   :  { %v646_v52 = vxor.u32 %v632_v34, %v618_v25 }
  0x38   :  { %v640_v0 = vshrl.u32 %v626_v51, 15 }
  0x39   :  { %v660_v2 = vmul.u32 2221713035, %v646_v52 }
  0x3a   :  { %v1588_v15 = vxor.u32 %v640_v0, %v626_v51 }
  0x3b   :  { %v674_v17 = vshrl.u32 %v660_v2, 16 }
  0x3c   :  { %1215 = vmatpush3.bf16.xpose.msra.mxu0 %v246_v36  ;;  %v656_v36 = vmul.u32 2221713035, %v642_v26  ;;  %v633_v26 = vshrl.u32 %v619_v11, 15  ;;  %v2175_v34 = vmul.u32 2221713035, %v1588_v15 }
  0x3d   :  { %v1605_v35 = vxor.u32 %v674_v17, %v660_v2 }
  0x3e   :  { %v670_v56 = vshrl.u32 %v656_v36, 16  ;;  %v1615_v51 = vxor.u32 %v633_v26, %v619_v11 }
  0x40   :  { %v1582_v5 = vxor.u32 %v670_v56, %v656_v36  ;;  %v594_v36 = vshrl.u32 %v580_v18, 16  ;;  %v596_v56 = vshrl.u32 %v582_v31, 16 }
  0x42   :  { %v608_v61 = vxor.u32 %v594_v36, %v580_v18  ;;  %v610_v18 = vxor.u32 %v596_v56, %v582_v31 }
  0x43   :  { %1217 = vmatmul.mubr.msk.bf16.vlgmr.msra.gmra.mrb[0].mxu0 %vm211_vm0, %v1252_v9  ;;  %v599_v9 = vxor.u32 %v585_v1, %v571_v58 }
  0x44   :  { %1218 = vmatprep.mubr.msk.bf16.mxu0 %vm211_vm0, %v1253_v37 }
  0x45   :  { %v613_v16 = vmul.u32 2146121005, %v599_v9  ;;  %v662_v9 = vmul.u32 2221713035, %v648_v60 }
  0x47   :  { %v627_v23 = vshrl.u32 %v613_v16, 15  ;;  %v676_v25 = vshrl.u32 %v662_v9, 16 }
  0x49   :  { %v641_v32 = vxor.u32 %v627_v23, %v613_v16  ;;  %v1613_v50 = vxor.u32 %v676_v25, %v662_v9  ;;  %v622_v25 = vmul.u32 2146121005, %v608_v61 }
  0x4b   :  { %1219 = vmatmul.mubr.msk.bf16.gmra.mrb[4].mxu0 %vm211_vm0, %v1253_v37  ;;  %v643_v37 = vxor.u32 %v629_v27, %v615_v20  ;;  %v655_v44 = vmul.u32 2221713035, %v641_v32  ;;  %v597_v27 = vshrl.u32 %v583_v12, 16  ;;  %v579_v32 = vxor.u32 %v1561_v53, %v563_v4 }
  0x4c   :  { %1220 = vmatprep.mubr.msk.bf16.mxu0 %vm211_vm0, %v1254_v38 }
  0x4d   :  { %v657_v57 = vmul.u32 2221713035, %v643_v37  ;;  %v669_v1 = vshrl.u32 %v655_v44, 16  ;;  %v581_v37 = vxor.u32 %v1561_v53, %v564_v13  ;;  %v611_v52 = vxor.u32 %v597_v27, %v583_v12 }
  0x4e   :  { %v661_v12 = vmul.u32 2221713035, %v1615_v51 }
  0x4f   :  { %v671_v6 = vshrl.u32 %v657_v57, 16  ;;  %v1590_v16 = vxor.u32 %v669_v1, %v655_v44  ;;  %v595_v62 = vshrl.u32 %v581_v37, 16  ;;  %v625_v13 = vmul.u32 2146121005, %v611_v52 }
  0x50   :  { %v624_v52 = vmul.u32 2146121005, %v610_v18  ;;  %v675_v18 = vshrl.u32 %v661_v12, 16 }
  0x51   :  { %v1596_v22 = vxor.u32 %v671_v6, %v657_v57  ;;  %v593_v57 = vshrl.u32 %v579_v32, 16  ;;  %v1637_v26 = vxor.u32 %v595_v62, %v581_v37 }
  0x53   :  { %1221 = vmatmul.mubr.msk.bf16.gmra.mrb[8].mxu0 %vm211_vm0, %v1254_v38  ;;  %v589_v38 = vshrl.u32 %v575_v28, 16 }
  0x54   :  { %1222 = vmatprep.mubr.msk.bf16.mxu0 %vm211_vm0, %v1255_v39 }
  0x55   :  { %v603_v58 = vxor.u32 %v589_v38, %v575_v28 }
  0x57   :  { %v617_v7 = vmul.u32 2146121005, %v603_v58 }
  0x59   :  { %v631_v23 = vshrl.u32 %v617_v7, 15 }
  0x5b   :  { %1223 = vmatmul.mubr.msk.bf16.gmra.mrb[12].mxu0 %vm211_vm0, %v1255_v39  ;;  %v658_v39 = vmul.u32 2221713035, %v644_v29  ;;  %v1610_v42 = vxor.u32 %v631_v23, %v617_v7 }
  0x5d   :  { %v672_v59 = vshrl.u32 %v658_v39, 16  ;;  %v659_v4 = vmul.u32 2221713035, %v1610_v42 }
  0x5f   :  { %v1584_v8 = vxor.u32 %v672_v59, %v658_v39  ;;  %v1619_v59 = vshrl.u32 %v2175_v34, 16  ;;  %v673_v31 = vshrl.u32 %v659_v4, 16 }
  0x84   :  { %v81_v63 = vpop.permute.xlu0 %80 }
  0x85   :  { %v91_v33 = vpop.permute.xlu1 %90 }
  0x88   :  { %v86_v24 = vpop.permute.xlu0 %85 }
  0x95   :  { %v96_v6 = vpop.permute.xlu1 %95 }
  0x97   :  { %v101_v37 = vpop.permute.xlu0 %100 }
  0x9b   :  { %v1726_v40 = vpop.permute.xlu0 %110 }
 0x116   :  { %v306_v14 = vpop.f32.mrb[0].mxu0 }
 0x117   :  { %v1593_v19 = vadd.f32 %v306_v14, %v81_v63  ;;  %v308_v20 = vpop.f32.mrb[1].mxu0 }
 0x118   :  { %v310_v10 = vpop.f32.mrb[2].mxu0  ;;  %v1622_v0 = vadd.f32 %v308_v20, %v81_v63  ;;  %v607_v20 = vxor.u32 %v593_v57, %v579_v32  ;;  %v639_v32 = vshrl.u32 %v625_v13, 15 }
 0x119   :  { %v357_v28 = vmin.f32 %v1593_v19, 20.0  ;;  %v1600_v29 = vadd.f32 %v310_v10, %v86_v24  ;;  %v312_v30 = vpop.f32.mrb[3].mxu0  ;;  %vm343_vm2 = vcmp.gt.f32.partialorder %v1593_v19, 20.0 }
 0x11a   :  { %v358_v27 = vmin.f32 %v1622_v0, 20.0 }
 0x11b   :  { %v371_v38 = vmul.f32 1.442695, %v357_v28  ;;  %v359_v39 = vmin.f32 %v1600_v29, 20.0  ;;  %v1640_v28 = vadd.f32 %v312_v30, %v86_v24  ;;  %v636_v24 = vshrl.u32 %v622_v25, 15 }
 0x11c   :  { %v623_v30 = vmul.u32 2146121005, %v1637_v26  ;;  %v373_v61 = vmul.f32 1.442695, %v358_v27  ;;  %vm345_vm1 = vcmp.gt.f32.partialorder %v1600_v29, 20.0 }
 0x11d   :  { %1258 = vpow2.f32 %v371_v38  ;;  %v375_v55 = vmul.f32 1.442695, %v359_v39  ;;  %v360_v62 = vmin.f32 %v1640_v28, 20.0 }
 0x11e   :  { %v316_v58 = vpop.f32.mrb[4].mxu0 }
 0x11f   :  { %1260 = vpow2.f32 %v375_v55  ;;  %v1624_v1 = vadd.f32 %v316_v58, %v91_v33  ;;  %v318_v2 = vpop.f32.mrb[5].mxu0  ;;  %v621_v55 = vmul.u32 2146121005, %v607_v20  ;;  %v1655_v20 = vxor.u32 %v639_v32, %v625_v13 }
 0x120   :  { %v1627_v7 = vadd.f32 %v318_v2, %v91_v33  ;;  %v320_v9 = vpop.f32.mrb[6].mxu0  ;;  %v377_v13 = vmul.f32 1.442695, %v360_v62 }
 0x121   :  { %v361_v14 = vmin.f32 %v1624_v1, 20.0  ;;  %v1632_v17 = vadd.f32 %v320_v9, %v96_v6  ;;  %v322_v63 = vpop.f32.mrb[7].mxu0  ;;  %vm347_vm5 = vcmp.gt.f32.partialorder %v1624_v1, 20.0 }
 0x122   :  { %v362_v23 = vmin.f32 %v1627_v7, 20.0  ;;  %v1635_v10 = vadd.f32 %v322_v63, %v96_v6  ;;  %vm348_vm6 = vcmp.gt.f32.partialorder %v1627_v7, 20.0 }
 0x123   :  { %v379_v33 = vmul.f32 1.442695, %v361_v14  ;;  %v363_v36 = vmin.f32 %v1632_v17, 20.0  ;;  %v1653_v14 = vpop.permute.xlu1 %105  ;;  %vm349_vm8 = vcmp.gt.f32.partialorder %v1632_v17, 20.0 }
 0x124   :  { %v381_v38 = vmul.f32 1.442695, %v362_v23  ;;  %v364_v39 = vmin.f32 %v1635_v10, 20.0  ;;  %vm350_vm10 = vcmp.gt.f32.partialorder %v1635_v10, 20.0 }
 0x125   :  { %1262 = vpow2.f32 %v379_v33  ;;  %v383_v51 = vmul.f32 1.442695, %v363_v36 }
 0x126   :  { %1264 = vpow2.f32 %v381_v38  ;;  %v385_v56 = vmul.f32 1.442695, %v364_v39  ;;  %v326_v57 = vpop.f32.mrb[8].mxu0  ;;  %v638_v38 = vshrl.u32 %v624_v52, 15 }
 0x127   :  { %v1647_v58 = vpop.eup %1258  ;;  %1266 = vpow2.f32 %v383_v51  ;;  %v1650_v2 = vadd.f32 %v326_v57, %v101_v37  ;;  %v328_v6 = vpop.f32.mrb[9].mxu0  ;;  %v1666_v51 = vxor.u32 %v636_v24, %v622_v25  ;;  %v637_v57 = vshrl.u32 %v623_v30, 15 }
 0x128   :  { %v399_v9 = vadd.f32 1.0, %v1647_v58  ;;  %1268 = vpow2.f32 %v385_v56  ;;  %v330_v63 = vpop.f32.mrb[10].mxu0  ;;  %v1660_v27 = vadd.f32 %v328_v6, %v101_v37  ;;  %v635_v56 = vshrl.u32 %v621_v55, 15 }
 0x129   :  { %v1657_v23 = vpop.eup %1260  ;;  %v365_v26 = vmin.f32 %v1650_v2, 20.0  ;;  %v1663_v33 = vadd.f32 %v330_v63, %v1653_v14  ;;  %v332_v36 = vpop.f32.mrb[11].mxu0  ;;  %v402_v54 = vmul.f32 -0.5, %v1647_v58  ;;  %v1672_v6 = vxor.u32 %v673_v31, %v659_v4 }
 0x12a   :  { %1270 = vlog2.f32 %v399_v9  ;;  %v417_v39 = vadd.f32 1.0, %v1657_v23  ;;  %v366_v37 = vmin.f32 %v1660_v27, 20.0  ;;  %v1675_v63 = vxor.u32 %v675_v18, %v661_v12 }
 0x12b   :  { %1272 = vpow2.f32 %v373_v61  ;;  %v387_v32 = vmul.f32 1.442695, %v365_v26  ;;  %v367_v9 = vmin.f32 %v1663_v33, 20.0  ;;  %v1677_v25 = vxor.u32 %v638_v38, %v624_v52 }
 0x12c   :  { %1274 = vlog2.f32 %v417_v39  ;;  %v420_v24 = vmul.f32 -0.5, %v1657_v23  ;;  %v389_v61 = vmul.f32 1.442695, %v366_v37  ;;  %v1680_v26 = vxor.u32 %v635_v56, %v621_v55 }
 0x12d   :  { %1276 = vpow2.f32 %v387_v32  ;;  %v391_v42 = vmul.f32 1.442695, %v367_v9  ;;  %v1688_v12 = vxor.u32 %v637_v57, %v623_v30  ;;  %v403_v18 = vadd.f32 1.0, %v402_v54 }
 0x12e   :  { %v336_v62 = vpop.f32.mrb[12].mxu0  ;;  %1278 = vpow2.f32 %v377_v13  ;;  %v405_v38 = vand.u32 2147483647, %v1647_v58  ;;  %v423_v13 = vand.u32 2147483647, %v1657_v23  ;;  %v421_v45 = vadd.f32 1.0, %v420_v24 }
 0x12f   :  { %v1683_v47 = vpop.eup %1262  ;;  %v1685_v4 = vpop.f32.mrb[13].mxu0  ;;  %1280 = vpow2.f32 %v389_v61  ;;  %v1722_v39 = vadd.f32 %v332_v36, %v1653_v14  ;;  %vm351_vm14 = vcmp.gt.f32.partialorder %v1650_v2, 20.0  ;;  %vm353_vm0 = vcmp.gt.f32.partialorder %v1663_v33, 20.0 }
 0x130   :  { %v1690_v52 = vpop.eup %1264  ;;  %v435_v55 = vadd.f32 1.0, %v1683_v47  ;;  %v340_v56 = vpop.f32.mrb[14].mxu0  ;;  %1282 = vpow2.f32 %v391_v42  ;;  %v438_v61 = vmul.f32 -0.5, %v1683_v47  ;;  %v404_v42 = vmul.f32 %v1647_v58, %v403_v18 }
 0x131   :  { %v1694_v32 = vpop.eup %1266  ;;  %v444_v37 = vadd.f32 1.0, %v1690_v52  ;;  %v341_v9 = vpop.f32.mrb[15].mxu0  ;;  %v447_v56 = vmul.f32 -0.5, %v1690_v52  ;;  %vm1708_vm3 = vcmp.lt.f32.partialorder %v405_v38, 0.0004427343  ;;  %v422_v38 = vmul.f32 %v1657_v23, %v421_v45 }
 0x132   :  { %v1699_v57 = vpop.eup %1268  ;;  %1284 = vlog2.f32 %v435_v55  ;;  %v453_v54 = vadd.f32 1.0, %v1694_v32  ;;  %vm1715_vm4 = vcmp.lt.f32.partialorder %v423_v13, 0.0004427343  ;;  %v456_v60 = vmul.f32 -0.5, %v1694_v32 }
 0x133   :  { %1286 = vlog2.f32 %v444_v37  ;;  %v462_v24 = vadd.f32 1.0, %v1699_v57  ;;  %v441_v37 = vand.u32 2147483647, %v1683_v47  ;;  %v439_v46 = vadd.f32 1.0, %v438_v61 }
 0x134   :  { %v1271_v34 = vpop.eup %1270  ;;  %1288 = vlog2.f32 %v453_v54  ;;  %v465_v54 = vmul.f32 -0.5, %v1699_v57  ;;  %v448_v21 = vadd.f32 1.0, %v447_v56  ;;  %v450_v3 = vand.u32 2147483647, %v1690_v52 }
 0x135   :  { %v1713_v55 = vpop.eup %1272  ;;  %v401_v18 = vmul.f32 0.6931472, %v1271_v34  ;;  %1290 = vlog2.f32 %v462_v24  ;;  %v459_v14 = vand.u32 2147483647, %v1694_v32  ;;  %v1733_v45 = vadd.f32 %v336_v62, %v1726_v40 }
 0x136   :  { %v1275_v58 = vpop.eup %1274  ;;  %v408_v23 = vadd.f32 1.0, %v1713_v55  ;;  %vm1740_vm7 = vcmp.lt.f32.partialorder %v441_v37, 0.0004427343  ;;  %v457_v56 = vadd.f32 1.0, %v456_v60  ;;  %v466_v31 = vadd.f32 1.0, %v465_v54 }
 0x137   :  { %v1277_v44 = vpop.eup %1276  ;;  %v419_v13 = vmul.f32 0.6931472, %v1275_v58  ;;  %v468_v58 = vand.u32 2147483647, %v1699_v57  ;;  %v407_v62 = vsel %vm1708_vm3, %v404_v42, %v401_v18  ;;  %v440_v11 = vmul.f32 %v1683_v47, %v439_v46 }
 0x138   :  { %v471_v34 = vadd.f32 1.0, %v1277_v44  ;;  %v1736_v36 = vpop.eup %1278  ;;  %v474_v48 = vmul.f32 -0.5, %v1277_v44  ;;  %v449_v37 = vmul.f32 %v1690_v52, %v448_v21  ;;  %vm1754_vm9 = vcmp.lt.f32.partialorder %v450_v3, 0.0004427343 }
 0x139   :  { %v425_v24 = vsel %vm1715_vm4, %v422_v38, %v419_v13  ;;  %v1746_v30 = vpop.eup %1280  ;;  %v477_v60 = vand.u32 2147483647, %v1277_v44  ;;  %vm1762_vm11 = vcmp.lt.f32.partialorder %v459_v14, 0.0004427343  ;;  %v368_v21 = vmin.f32 %v1722_v39, 20.0 }
 0x13a   :  { %1292 = vlog2.f32 %v471_v34  ;;  %v1750_v53 = vpop.eup %1282  ;;  %v527_v42 = vsel %vm345_vm1, %v1600_v29, %v425_v24  ;;  %v525_v46 = vsel %vm343_vm2, %v1593_v19, %v407_v62  ;;  %v458_v18 = vmul.f32 %v1694_v32, %v457_v56 }
 0x13b   :  { %v489_v47 = vadd.f32 1.0, %v1750_v53  ;;  %vm1772_vm12 = vcmp.lt.f32.partialorder %v468_v58, 0.0004427343  ;;  %v467_v34 = vmul.f32 %v1699_v57, %v466_v31  ;;  %v475_v24 = vadd.f32 1.0, %v474_v48 }
 0x13c   :  { %v1285_v13 = vpop.eup %1284  ;;  %v1777_v49 = vmul.f32 1.0050251, %v527_v42  ;;  %vm1781_vm13 = vcmp.lt.f32.partialorder %v477_v60, 0.0004427343  ;;  %v492_v48 = vmul.f32 -0.5, %v1750_v53 }
 0x13d   :  { %v1287_v3 = vpop.eup %1286  ;;  %v437_v52 = vmul.f32 0.6931472, %v1285_v13  ;;  %1294 = vlog2.f32 %v489_v47  ;;  %v393_v57 = vmul.f32 1.442695, %v368_v21 }
 0x13e   :  { %v1289_v29 = vpop.eup %1288  ;;  %v446_v14 = vmul.f32 0.6931472, %v1287_v3 }
 0x13f   :  { %v443_v43 = vsel %vm1740_vm7, %v440_v11, %v437_v52  ;;  %v455_v41 = vmul.f32 0.6931472, %v1289_v29  ;;  %v1291_v32 = vpop.eup %1290  ;;  %v480_v11 = vadd.f32 1.0, %v1746_v30  ;;  %1296 = vpow2.f32 %v393_v57 }
 0x140   :  { %v529_v56 = vsel %vm347_vm5, %v1624_v1, %v443_v43  ;;  %v452_v31 = vsel %vm1754_vm9, %v449_v37, %v446_v14  ;;  %v464_v62 = vmul.f32 0.6931472, %v1291_v32  ;;  %v476_v1 = vmul.f32 %v1277_v44, %v475_v24 }
 0x141   :  { %v530_v61 = vsel %vm348_vm6, %v1627_v7, %v452_v31  ;;  %v461_v58 = vsel %vm1762_vm11, %v458_v18, %v455_v41  ;;  %v1797_v60 = vmul.f32 1.0050251, %v529_v56  ;;  %v369_v7 = vmin.f32 %v1733_v45, 20.0 }
 0x142   :  { %v531_v43 = vsel %vm349_vm8, %v1632_v17, %v461_v58  ;;  %v470_v38 = vsel %vm1772_vm12, %v467_v34, %v464_v62  ;;  %v1809_v41 = vadd.f32 %v1685_v4, %v1726_v40  ;;  %v1811_v42 = vmul.f32 1.0050251, %v530_v61 }
 0x143   :  { %v1802_v37 = vmul.f32 1.0050251, %v531_v43  ;;  %v532_v17 = vsel %vm350_vm10, %v1635_v10, %v470_v38  ;;  %v493_v44 = vadd.f32 1.0, %v492_v48  ;;  %1298 = vlog2.f32 %v408_v23 }
 0x144   :  { %v1293_v13 = vpop.eup %1292  ;;  %v1818_v47 = vmul.f32 1.0050251, %v532_v17  ;;  %v395_v3 = vmul.f32 1.442695, %v369_v7  ;;  %1300 = vlog2.f32 %v480_v11  ;;  %v495_v40 = vand.u32 2147483647, %v1750_v53 }
 0x145   :  { %v1180_v9 = vpack.c.bf16 %v1802_v37, %v1797_v60  ;;  %v473_v21 = vmul.f32 0.6931472, %v1293_v13  ;;  %v370_v4 = vmin.f32 %v1809_v41, 20.0  ;;  %v426_v52 = vadd.f32 1.0, %v1736_v36 }
 0x146   :  { %v1823_v18 = vmul.f32 1.0050251, %v525_v46  ;;  %v1177_v10 = vpack.c.bf16 %v1818_v47, %v1811_v42  ;;  %1302 = vpow2.f32 %v395_v3  ;;  %v411_v14 = vmul.f32 -0.5, %v1713_v55 }
 0x147   :  { %v479_v23 = vsel %vm1781_vm13, %v476_v1, %v473_v21  ;;  %v1295_v54 = vpop.eup %1294  ;;  %v397_v29 = vmul.f32 1.442695, %v370_v4  ;;  %1304 = vlog2.f32 %v426_v52  ;;  %v2203_v34 = vmul.u32 2221713035, %v1666_v51 }
 0x148   :  { %v491_v32 = vmul.f32 0.6931472, %v1295_v54  ;;  %v494_v46 = vmul.f32 %v1750_v53, %v493_v44  ;;  %v1174_v56 = vpack.c.bf16 %v1777_v49, %v1823_v18  ;;  %v533_v19 = vsel %vm351_vm14, %v1650_v2, %v479_v23  ;;  %v775_v49 = vpop.permute.xlu0 %774 }
 0x149   :  { %v678_v24 = vshrl.u32 %v2203_v34, 16  ;;  %vm496_vm15 = vcmp.lt.f32.partialorder %v495_v40, 0.0004427343  ;;  %1306 = vpow2.f32 %v397_v29  ;;  %v665_v31 = vmul.u32 2221713035, %v1688_v12  ;;  %v1842_v62 = vpop.eup %1296 }
 0x14a   :  { %v497_v48 = vsel %vm496_vm15, %v494_v46, %v491_v32  ;;  %v429_v57 = vmul.f32 -0.5, %v1736_v36  ;;  %v2204_v61 = vmul.u32 2221713035, %v1677_v25  ;;  %v412_v11 = vadd.f32 1.0, %v411_v14 }
 0x14b   :  { %v535_v53 = vsel %vm353_vm0, %v1663_v33, %v497_v48  ;;  %v414_v43 = vand.u32 2147483647, %v1713_v55  ;;  %v2205_v2 = vmul.u32 2221713035, %v1680_v26  ;;  %v1848_v38 = vmul.f32 1.0050251, %v533_v19 }
 0x14c   :  { %v680_v58 = vshrl.u32 %v2204_v61, 16  ;;  %v1850_v12 = vmul.f32 1.0050251, %v535_v53  ;;  %v498_v7 = vadd.f32 1.0, %v1842_v62  ;;  %v2206_v13 = vshrl.u32 %v1582_v5, 8 }
 0x14d   :  { %v677_v1 = vshrl.u32 %v2205_v2, 16  ;;  %v2209_v33 = vshrl.u32 %v1584_v8, 8  ;;  %v2212_v21 = vmov %v2203_v34  ;;  %v1299_v40 = vpop.eup %1298  ;;  %v483_v4 = vmul.f32 -0.5, %v1746_v30 }
 0x14e   :  { %vm1855_vm1 = vcmp.ge.s32.totalorder %v2206_v13, 83886  ;;  %v1867_v3 = vxor.u32 %v678_v24, %v2212_v21  ;;  %v2213_v52 = vshrl.u32 %v1590_v16, 8  ;;  %v2216_v23 = vshrl.u32 %v1596_v22, 8  ;;  %v1301_v46 = vpop.eup %1300 }
 0x14f   :  { %vm1861_vm2 = vcmp.ge.s32.totalorder %v2209_v33, 83886  ;;  %v701_v54 = vshrl.u32 %v1672_v6, 8  ;;  %v703_v51 = vshrl.u32 %v1675_v63, 8  ;;  %v2219_v29 = vmul.u32 2221713035, %v1655_v20 }
 0x150   :  { %vm1872_vm3 = vcmp.ge.s32.totalorder %v2213_v52, 83886  ;;  %vm1878_vm4 = vcmp.ge.s32.totalorder %v2216_v23, 83886  ;;  %v1186_v16 = vpack.c.bf16 %v1850_v12, %v1848_v38  ;;  %1308 = vlog2.f32 %v498_v7  ;;  %v1904_v53 = vpop.eup %1302  ;;  %vm1170_vm12 = vmpackc.low %vm1861_vm2, %vm1855_vm1 }
 0x151   :  { %v681_v14 = vshrl.u32 %v2219_v29, 16  ;;  %v430_v34 = vadd.f32 1.0, %v429_v57  ;;  %v2220_v24 = vshrl.u32 %v1605_v35, 8  ;;  %v2223_v32 = vshrl.u32 %v1613_v50, 8  ;;  %v1305_v21 = vpop.eup %1304  ;;  %vm1173_vm15 = vmpackc.low %vm1878_vm4, %vm1872_vm3 }
 0x152   :  { %v679_v63 = vshrl.u32 %v665_v31, 16  ;;  %v410_v19 = vmul.f32 0.6931472, %v1299_v40  ;;  %v413_v48 = vmul.f32 %v1713_v55, %v412_v11  ;;  %v432_v61 = vand.u32 2147483647, %v1736_v36 }
 0x153   :  { %vm1890_vm5 = vcmp.ge.s32.totalorder %v2220_v24, 83886  ;;  %vm1896_vm6 = vcmp.ge.s32.totalorder %v2223_v32, 83886  ;;  %v2226_v57 = vmul.u32 2221713035, %v1677_v25  ;;  %v486_v2 = vand.u32 2147483647, %v1746_v30  ;;  %v1920_v23 = vpop.eup %1306 }
 0x154   :  { %vm1907_vm7 = vcmp.lt.f32.partialorder %v414_v43, 0.0004427343  ;;  %v706_v7 = vshrl.u32 %v1867_v3, 8  ;;  %v2229_v13 = vmul.u32 2221713035, %v1680_v26  ;;  %v484_v55 = vadd.f32 1.0, %v483_v4 }
 0x155   :  { %v694_v35 = vxor.u32 %v680_v58, %v2226_v57  ;;  %v501_v11 = vmul.f32 -0.5, %v1842_v62  ;;  %v507_v25 = vadd.f32 1.0, %v1904_v53  ;;  %v416_v58 = vsel %vm1907_vm7, %v413_v48, %v410_v19  ;;  %vm1176_vm7 = vmpackc.low %vm1896_vm6, %vm1890_vm5 }
 0x156   :  { %v691_v33 = vxor.u32 %v677_v1, %v2229_v13  ;;  %vm344_vm8 = vcmp.gt.f32.partialorder %v1622_v0, 20.0  ;;  %v428_v43 = vmul.f32 0.6931472, %v1305_v21  ;;  %v431_v40 = vmul.f32 %v1736_v36, %v430_v34 }
 0x157   :  { %v693_v52 = vxor.u32 %v679_v63, %v665_v31  ;;  %v482_v3 = vmul.f32 0.6931472, %v1301_v46  ;;  %1310 = vlog2.f32 %v507_v25  ;;  %vm433_vm9 = vcmp.lt.f32.partialorder %v432_v61, 0.0004427343 }
 0x158   :  { %v526_v26 = vsel %vm344_vm8, %v1622_v0, %v416_v58  ;;  %vm346_vm10 = vcmp.gt.f32.partialorder %v1640_v28, 20.0  ;;  %vm1924_vm11 = vcmp.lt.f32.partialorder %v486_v2, 0.0004427343  ;;  %v516_v4 = vadd.f32 1.0, %v1920_v23 }
 0x159   :  { %v434_v29 = vsel %vm433_vm9, %v431_v40, %v428_v43  ;;  %v485_v24 = vmul.f32 %v1746_v30, %v484_v55  ;;  %v502_v36 = vadd.f32 1.0, %v501_v11  ;;  %v504_v31 = vand.u32 2147483647, %v1842_v62 }
 0x15a   :  { %v528_v34 = vsel %vm346_vm10, %v1640_v28, %v434_v29  ;;  %v510_v32 = vmul.f32 -0.5, %v1904_v53  ;;  %1312 = vlog2.f32 %v516_v4  ;;  %v726_v0 = vmul.f32 1.0050251, %v526_v26  ;;  %v1309_v48 = vpop.eup %1308  ;;  %v2249_v4 = vld [vmem:[#allocation8_spill] sm:$0xff] }
 0x15b   :  { %v728_v63 = vmul.f32 1.0050251, %v528_v34  ;;  %v488_v46 = vsel %vm1924_vm11, %v485_v24, %v482_v3  ;;  %vm1939_vm13 = vcmp.ge.s32.totalorder %v701_v54, 83886  ;;  %vm1943_vm14 = vcmp.ge.s32.totalorder %v703_v51, 83886  ;;  %v1256_v3 = vld [vmem:[%s2165_s4] sm:$0xff]  }
 0x15c   :  { %v708_v28 = vshrl.u32 %v694_v35, 8  ;;  %v705_v57 = vshrl.u32 %v691_v33, 8  ;;  %v707_v2 = vshrl.u32 %v693_v52, 8  ;;  %v2236_v50 = vmul.u32 2221713035, %v1655_v20  ;;  %vm1179_vm2 = vmpackc.low %vm1943_vm14, %vm1939_vm13  ;;  %v770_v20 = vpop.permute.xlu1 %769 }
 0x15d   :  { %v1171_v61 = vpack.c.bf16 %v728_v63, %v726_v0  ;;  %vm352_vm0 = vcmp.gt.f32.partialorder %v1660_v27, 20.0  ;;  %v500_v13 = vmul.f32 0.6931472, %v1309_v48  ;;  %v503_v51 = vmul.f32 %v1842_v62, %v502_v36  ;;  %v2251_v36 = vld [vmem:[#allocation10_spill] sm:$0xff]  ;;  %v2253_v63 = vld [vmem:[#allocation9_spill] sm:$0xff] }
 0x15e   :  { %v695_v54 = vxor.u32 %v681_v14, %v2236_v50  ;;  %v519_v21 = vmul.f32 -0.5, %v1920_v23  ;;  %v534_v35 = vsel %vm352_vm0, %v1660_v27, %v488_v46  ;;  %vm505_vm8 = vcmp.lt.f32.partialorder %v504_v31, 0.0004427343 }
 0x15f   :  { %v511_v33 = vadd.f32 1.0, %v510_v32  ;;  %1172 = vmatprep.subr.msk.bf16.mxu1 %vm1170_vm12, %v1171_v61  ;;  %vm1966_vm9 = vcmp.ge.s32.totalorder %v706_v7, 83886  ;;  %vm354_vm10 = vcmp.gt.f32.partialorder %v1722_v39, 20.0  ;;  %v506_v62 = vsel %vm505_vm8, %v503_v51, %v500_v13  ;;  %v2252_v32 = vld [vmem:[#allocation11_spill] sm:$0xff] }
 0x160   :  { %v513_v14 = vand.u32 2147483647, %v1904_v53  ;;  %1175 = vmatpush1.bf16.msk.msra.mxu1 %vm1173_vm15, %v1174_v56  ;;  %vm1980_vm1 = vcmp.ge.s32.totalorder %v708_v28, 83886  ;;  %v536_v17 = vsel %vm354_vm10, %v1722_v39, %v506_v62  ;;  %v2241_v44 = vmul.u32 2221713035, %v1588_v15 }
 0x161   :  { %1178 = vmatprep.subr.msk.bf16.mxu1 %vm1176_vm7, %v1177_v10  ;;  %vm1995_vm3 = vcmp.ge.s32.totalorder %v705_v57, 83886  ;;  %v709_v18 = vshrl.u32 %v695_v54, 8  ;;  %v1311_v56 = vpop.eup %1310  ;;  %v734_v39 = vmul.f32 1.0050251, %v534_v35  ;;  %v736_v5 = vmul.f32 1.0050251, %v536_v17  ;;  %vm1182_vm5 = vmpackc.low %vm1980_vm1, %vm1966_vm9 }
 0x162   :  { %v696_v22 = vxor.u32 %v1619_v59, %v2241_v44  ;;  %v520_v15 = vadd.f32 1.0, %v519_v21  ;;  %vm1999_vm4 = vcmp.ge.s32.totalorder %v707_v2, 83886  ;;  %v509_v42 = vmul.f32 0.6931472, %v1311_v56 }
 0x163   :  { %v512_v47 = vmul.f32 %v1904_v53, %v511_v33  ;;  %v522_v10 = vand.u32 2147483647, %v1920_v23  ;;  %v1183_v8 = vpack.c.bf16 %v736_v5, %v734_v39  ;;  %vm514_vm6 = vcmp.lt.f32.partialorder %v513_v14, 0.0004427343  ;;  %vm1185_vm12 = vmpackc.low %vm1999_vm4, %vm1995_vm3 }
 0x164   :  { %1181 = vmatpush1.bf16.msk.msra.mxu1 %vm1179_vm2, %v1180_v9  ;;  %v1313_v6 = vpop.eup %1312  ;;  %vm355_vm11 = vcmp.gt.f32.partialorder %v1733_v45, 20.0  ;;  %v710_v55 = vshrl.u32 %v696_v22, 8  ;;  %v521_v25 = vmul.f32 %v1920_v23, %v520_v15  ;;  %vm723_vm13 = vcmp.ge.s32.totalorder %v709_v18, 83886 }
 0x165   :  { %v515_v7 = vsel %vm514_vm6, %v512_v47, %v509_v42  ;;  %v518_v11 = vmul.f32 0.6931472, %v1313_v6  ;;  %1184 = vmatprep.subr.msk.bf16.mxu1 %vm1182_vm5, %v1183_v8  ;;  %vm523_vm14 = vcmp.lt.f32.partialorder %v522_v10, 0.0004427343  ;;  %vm356_vm15 = vcmp.gt.f32.partialorder %v1809_v41, 20.0 }
 0x166   :  { %v537_v53 = vsel %vm355_vm11, %v1733_v45, %v515_v7  ;;  %vm724_vm0 = vcmp.ge.s32.totalorder %v710_v55, 83886  ;;  %vm797_vm7 = vcmask 1040384   ;;  %vm790_vm8 = vcmask 408576  }
 0x167   :  { %v737_v58 = vmul.f32 1.0050251, %v537_v53  ;;  %v524_v60 = vsel %vm523_vm14, %v521_v25, %v518_v11  ;;  %v2246_v38 = vmov 0   ;;  %v940_v12 = vstv %s939_s3 }
 0x168   :  { %1187 = vmatpush1.bf16.msk.msra.mxu1 %vm1185_vm12, %v1186_v16  ;;  %v538_v37 = vsel %vm356_vm15, %v1809_v41, %v524_v60  ;;  %v1257_v41 = vld [vmem:[%s2165_s4 + $0x8] ss:$0 sps:$4 sm:$0x33]   ;;  %v2250_v29 = vmul.u32 2654435761, %v2249_v4 }
 0x169   :  { %v751_v9 = vsel %vm723_vm13, %v737_v58, 0.0  ;;  %v738_v43 = vmul.f32 1.0050251, %v538_v37  ;;  %v2247_v16 = vld [vmem:[#allocation7_spill] sm:$0xff]  ;;  %v2254_v46 = vmul.u32 2654435761, %v2253_v63 }
 0x16a   :  { %v762_v45 = vpack.c.bf16 %v751_v9, %v751_v9  ;;  %v2248_v26 = vmul.u32 2654435761, %v2247_v16  ;;  %v942_v24 = vxor.u32 %v940_v12, %v2250_v29 }
 0x16b   :  { %v752_v40 = vsel %vm724_vm0, %v738_v43, 0.0  ;;  %v943_v30 = vxor.u32 %v940_v12, %v2254_v46 }
 0x16c   :  { %v763_v52 = vpack.c.bf16 %v752_v40, %v752_v40  ;;  %v799_v23 = vsel %vm797_vm7, %v762_v45, 0  ;;  %v941_v1 = vxor.u32 %v940_v12, %v2248_v26  ;;  %v947_v34 = vxor.u32 %v942_v24, %v2251_v36  ;;  %v780_v45 = vpop.permute.xlu1 %779 }
 0x16d   :  { %v946_v19 = vxor.u32 %v942_v24, %v2252_v32  ;;  %v948_v2 = vxor.u32 %v943_v30, %v2252_v32  ;;  %v949_v50 = vxor.u32 %v943_v30, %v2251_v36 }
 0x16e   :  { %1188 = vmatprep.subr.msk.bf16.mxu1 %vm797_vm7, %v763_v52  ;;  %v945_v31 = vxor.u32 %v941_v1, %v2251_v36  ;;  %v944_v0 = vxor.u32 %v941_v1, %v2252_v32  ;;  %v953_v48 = vshrl.u32 %v947_v34, 16 }
 0x16f   :  { %811 = vmatpush1.bf16.msra.mxu1 %v799_v23  ;;  %v952_v57 = vshrl.u32 %v946_v19, 16  ;;  %v954_v35 = vshrl.u32 %v948_v2, 16  ;;  %v955_v33 = vshrl.u32 %v949_v50, 16 }
 0x170   :  { %v951_v28 = vshrl.u32 %v945_v31, 16  ;;  %v950_v61 = vshrl.u32 %v944_v0, 16  ;;  %v959_v13 = vxor.u32 %v953_v48, %v947_v34 }
 0x171   :  { %v958_v21 = vxor.u32 %v952_v57, %v946_v19  ;;  %v960_v5 = vxor.u32 %v954_v35, %v948_v2  ;;  %v961_v47 = vxor.u32 %v955_v33, %v949_v50 }
 0x172   :  { %1189 = vmatmul.mubr.msk.bf16.vlgmr.msra.gmra.mrb[0].mxu1 %vm790_vm8, %v1256_v3  ;;  %v957_v54 = vxor.u32 %v951_v28, %v945_v31  ;;  %v956_v51 = vxor.u32 %v950_v61, %v944_v0  ;;  %v965_v44 = vmul.u32 2146121005, %v959_v13 }
 0x173   :  { %846 = vmatprep.mubr.bf16.mxu1 %v2246_v38  ;;  %v964_v39 = vmul.u32 2146121005, %v958_v21  ;;  %v966_v37 = vmul.u32 2146121005, %v960_v5 }
 0x174   :  { %v963_v14 = vmul.u32 2146121005, %v957_v54  ;;  %v962_v22 = vmul.u32 2146121005, %v956_v51  ;;  %v971_v53 = vshrl.u32 %v965_v44, 15 }
 0x175   :  { %v970_v60 = vshrl.u32 %v964_v39, 15  ;;  %v967_v43 = vmul.u32 2146121005, %v961_v47  ;;  %v972_v29 = vshrl.u32 %v966_v37, 15 }
 0x176   :  { %v969_v6 = vshrl.u32 %v963_v14, 15  ;;  %v968_v11 = vshrl.u32 %v962_v22, 15 }
 0x177   :  { %v976_v4 = vxor.u32 %v970_v60, %v964_v39  ;;  %v973_v36 = vshrl.u32 %v967_v43, 15  ;;  %v978_v28 = vxor.u32 %v972_v29, %v966_v37 }
 0x178   :  { %v975_v23 = vxor.u32 %v969_v6, %v963_v14  ;;  %v974_v12 = vxor.u32 %v968_v11, %v962_v22 }
 0x179   :  { %v982_v19 = vmul.u32 2221713035, %v976_v4  ;;  %v979_v48 = vxor.u32 %v973_v36, %v967_v43  ;;  %v984_v21 = vmul.u32 2221713035, %v978_v28 }
 0x17a   :  { %1190 = vmatmul.mubr.msk.bf16.gmra.mrb[4].mxu1 %vm790_vm8, %v1257_v41  ;;  %v977_v41 = vxor.u32 %v971_v53, %v965_v44  ;;  %v981_v32 = vmul.u32 2221713035, %v975_v23  ;;  %v980_v46 = vmul.u32 2221713035, %v974_v12 }
 0x17b   :  { %1076 = vmatprep.mubr.bf16.mxu1 %v2246_v38  ;;  %v988_v51 = vshrl.u32 %v982_v19, 16  ;;  %v990_v39 = vshrl.u32 %v984_v21, 16 }
 0x17c   :  { %v983_v63 = vmul.u32 2221713035, %v977_v41  ;;  %v987_v57 = vshrl.u32 %v981_v32, 16  ;;  %v986_v50 = vshrl.u32 %v980_v46, 16 }
 0x17e   :  { %v989_v2 = vshrl.u32 %v983_v63, 16  ;;  %v992_v22 = vxor.u32 %v986_v50, %v980_v46 }
 0x180   :  { %v995_v44 = vxor.u32 %v989_v2, %v983_v63  ;;  %v998_v11 = vshrl.u32 %v992_v22, 8 }
 0x182   :  { %vm2102_vm5 = vcmp.ge.s32.totalorder %v998_v11, 83886 }
 0x245   :  { %v838_v62 = vpop.f32.mrb[0].mxu1 }
 0x246   :  { %v2047_v27 = vadd.f32 %v838_v62, %v770_v20  ;;  %v840_v17 = vpop.f32.mrb[1].mxu1 }
 0x247   :  { %v2049_v18 = vadd.f32 %v840_v17, %v770_v20  ;;  %v842_v56 = vpop.f32.mrb[2].mxu1  ;;  %v985_v20 = vmul.u32 2221713035, %v979_v48  ;;  %v993_v17 = vxor.u32 %v987_v57, %v981_v32 }
 0x248   :  { %v861_v15 = vmin.f32 %v2047_v27, 20.0  ;;  %v2052_v59 = vadd.f32 %v842_v56, %v775_v49  ;;  %v844_v42 = vpop.f32.mrb[3].mxu1  ;;  %v994_v56 = vxor.u32 %v988_v51, %v982_v19  ;;  %vm855_vm9 = vcmp.gt.f32.partialorder %v2047_v27, 20.0 }
 0x249   :  { %v862_v10 = vmin.f32 %v2049_v18, 20.0  ;;  %v2055_v8 = vadd.f32 %v844_v42, %v775_v49  ;;  %v999_v6 = vshrl.u32 %v993_v17, 8  ;;  %vm856_vm10 = vcmp.gt.f32.partialorder %v2049_v18, 20.0 }
 0x24a   :  { %v867_v7 = vmul.f32 1.442695, %v861_v15  ;;  %v863_v55 = vmin.f32 %v2052_v59, 20.0  ;;  %v991_v15 = vshrl.u32 %v985_v20, 16  ;;  %vm857_vm3 = vcmp.gt.f32.partialorder %v2052_v59, 20.0 }
 0x24b   :  { %v869_v25 = vmul.f32 1.442695, %v862_v10  ;;  %v864_v58 = vmin.f32 %v2055_v8, 20.0  ;;  %vm2090_vm1 = vcmp.ge.s32.totalorder %v999_v6, 83886  ;;  %vm858_vm4 = vcmp.gt.f32.partialorder %v2055_v8, 20.0 }
 0x24c   :  { %1314 = vpow2.f32 %v867_v7  ;;  %v871_v9 = vmul.f32 1.442695, %v863_v55  ;;  %v1001_v7 = vshrl.u32 %v995_v44, 8  ;;  %v2085_v43 = vxor.u32 %v991_v15, %v985_v20 }
 0x24d   :  { %1316 = vpow2.f32 %v869_v25  ;;  %v873_v40 = vmul.f32 1.442695, %v864_v58  ;;  %v848_v52 = vpop.f32.mrb[4].mxu1  ;;  %v1000_v25 = vshrl.u32 %v994_v56, 8  ;;  %v2081_v58 = vxor.u32 %v990_v39, %v984_v21 }
 0x24e   :  { %1318 = vpow2.f32 %v871_v9  ;;  %v2059_v3 = vadd.f32 %v848_v52, %v780_v45  ;;  %v850_v38 = vpop.f32.mrb[5].mxu1  ;;  %vm2094_vm2 = vcmp.ge.s32.totalorder %v1001_v7, 83886 }
 0x24f   :  { %1320 = vpow2.f32 %v873_v40  ;;  %v2061_v26 = vadd.f32 %v850_v38, %v780_v45  ;;  %v852_v1 = vpop.f32.mrb[6].mxu1  ;;  %vm2106_vm6 = vcmp.ge.s32.totalorder %v1000_v25, 83886  ;;  %v1002_v39 = vshrl.u32 %v2081_v58, 8  ;;  %vm1191_vm0 = vmpackc.low %vm2094_vm2, %vm2090_vm1 }
 0x250   :  { %v865_v24 = vmin.f32 %v2059_v3, 20.0  ;;  %v853_v31 = vpop.f32.mrb[7].mxu1  ;;  %vm859_vm7 = vcmp.gt.f32.partialorder %v2059_v3, 20.0  ;;  %vm1037_vm2 = vcmask 1041408  }
 0x251   :  { %v866_v34 = vmin.f32 %v2061_v26, 20.0 }
 0x252   :  { %v875_v0 = vmul.f32 1.442695, %v865_v24 }
 0x253   :  { %v877_v30 = vmul.f32 1.442695, %v866_v34 }
 0x254   :  { %1322 = vpow2.f32 %v875_v0 }
 0x255   :  { %1324 = vpow2.f32 %v877_v30 }
 0x256   :  { %v1315_v61 = vpop.eup %1314 }
 0x257   :  { %v2065_v54 = vpop.eup %1316  ;;  %v879_v13 = vadd.f32 1.0, %v1315_v61  ;;  %v882_v5 = vmul.f32 -0.5, %v1315_v61  ;;  %v885_v45 = vand.u32 2147483647, %v1315_v61 }
 0x258   :  { %v2067_v35 = vpop.eup %1318  ;;  %v888_v33 = vadd.f32 1.0, %v2065_v54  ;;  %v891_v42 = vmul.f32 -0.5, %v2065_v54  ;;  %v894_v52 = vand.u32 2147483647, %v2065_v54 }
 0x259   :  { %v2070_v62 = vpop.eup %1320  ;;  %1326 = vlog2.f32 %v879_v13  ;;  %v897_v14 = vadd.f32 1.0, %v2067_v35  ;;  %v900_v10 = vmul.f32 -0.5, %v2067_v35  ;;  %v883_v60 = vadd.f32 1.0, %v882_v5 }
 0x25a   :  { %1328 = vlog2.f32 %v888_v33  ;;  %v906_v49 = vadd.f32 1.0, %v2070_v62  ;;  %v909_v37 = vmul.f32 -0.5, %v2070_v62  ;;  %v892_v40 = vadd.f32 1.0, %v891_v42 }
 0x25b   :  { %1330 = vlog2.f32 %v897_v14  ;;  %v901_v23 = vadd.f32 1.0, %v900_v10  ;;  %v903_v1 = vand.u32 2147483647, %v2067_v35  ;;  %v884_v34 = vmul.f32 %v1315_v61, %v883_v60 }
 0x25c   :  { %1332 = vlog2.f32 %v906_v49  ;;  %v910_v32 = vadd.f32 1.0, %v909_v37  ;;  %v912_v0 = vand.u32 2147483647, %v2070_v62  ;;  %vm886_vm11 = vcmp.lt.f32.partialorder %v885_v45, 0.0004427343 }
 0x25d   :  { %v893_v30 = vmul.f32 %v2065_v54, %v892_v40  ;;  %vm895_vm12 = vcmp.lt.f32.partialorder %v894_v52, 0.0004427343  ;;  %v902_v57 = vmul.f32 %v2067_v35, %v901_v23  ;;  %vm904_vm13 = vcmp.lt.f32.partialorder %v903_v1, 0.0004427343  ;;  %v1031_v40 = vpop.permute.xlu0 %1030 }
 0x25e   :  { %v2075_v47 = vpop.eup %1322  ;;  %v911_v33 = vmul.f32 %v2070_v62, %v910_v32  ;;  %vm913_vm14 = vcmp.lt.f32.partialorder %v912_v0, 0.0004427343 }
 0x25f   :  { %v2078_v55 = vpop.eup %1324  ;;  %v915_v53 = vadd.f32 1.0, %v2075_v47  ;;  %v918_v4 = vmul.f32 -0.5, %v2075_v47  ;;  %v921_v20 = vand.u32 2147483647, %v2075_v47 }
 0x260   :  { %v924_v9 = vadd.f32 1.0, %v2078_v55  ;;  %v927_v19 = vmul.f32 -0.5, %v2078_v55  ;;  %v930_v22 = vand.u32 2147483647, %v2078_v55 }
 0x261   :  { %1334 = vlog2.f32 %v915_v53  ;;  %v919_v13 = vadd.f32 1.0, %v918_v4  ;;  %vm922_vm15 = vcmp.lt.f32.partialorder %v921_v20, 0.0004427343 }
 0x262   :  { %1336 = vlog2.f32 %v924_v9  ;;  %v928_v14 = vadd.f32 1.0, %v927_v19  ;;  %vm931_vm8 = vcmp.lt.f32.partialorder %v930_v22, 0.0004427343 }
 0x263   :  { %v1327_v12 = vpop.eup %1326  ;;  %v920_v56 = vmul.f32 %v2075_v47, %v919_v13 }
 0x264   :  { %v1329_v36 = vpop.eup %1328  ;;  %v881_v31 = vmul.f32 0.6931472, %v1327_v12  ;;  %v929_v7 = vmul.f32 %v2078_v55, %v928_v14 }
 0x265   :  { %v1331_v63 = vpop.eup %1330  ;;  %v890_v46 = vmul.f32 0.6931472, %v1329_v36 }
 0x266   :  { %v887_v28 = vsel %vm886_vm11, %v884_v34, %v881_v31  ;;  %v899_v48 = vmul.f32 0.6931472, %v1331_v63  ;;  %v1333_v2 = vpop.eup %1332 }
 0x267   :  { %v933_v61 = vsel %vm855_vm9, %v2047_v27, %v887_v28  ;;  %v896_v50 = vsel %vm895_vm12, %v893_v30, %v890_v46  ;;  %v908_v21 = vmul.f32 0.6931472, %v1333_v2  ;;  %vm1194_vm9 = vmpackc.low %vm2106_vm6, %vm2102_vm5 }
 0x268   :  { %v905_v51 = vsel %vm904_vm13, %v902_v57, %v899_v48  ;;  %v934_v54 = vsel %vm856_vm10, %v2049_v18, %v896_v50  ;;  %v1010_v27 = vmul.f32 1.0050251, %v933_v61  ;;  %v1003_v18 = vshrl.u32 %v2085_v43, 8 }
 0x269   :  { %v935_v35 = vsel %vm857_vm3, %v2052_v59, %v905_v51  ;;  %v914_v44 = vsel %vm913_vm14, %v911_v33, %v908_v21  ;;  %v1011_v5 = vmul.f32 1.0050251, %v934_v54  ;;  %vm860_vm10 = vcmp.gt.f32.partialorder %v2061_v26, 20.0 }
 0x26a   :  { %v1012_v17 = vmul.f32 1.0050251, %v935_v35  ;;  %v936_v62 = vsel %vm858_vm4, %v2055_v8, %v914_v44  ;;  %vm1008_vm3 = vcmp.ge.s32.totalorder %v1002_v39, 83886  ;;  %vm1009_vm1 = vcmp.ge.s32.totalorder %v1003_v18, 83886 }
 0x26b   :  { %v1335_v49 = vpop.eup %1334  ;;  %v1013_v42 = vmul.f32 1.0050251, %v936_v62  ;;  %vm1033_vm4 = vcmask 162816   ;;  %vm1085_vm13 = vcmp.eq.s32.totalorder %v2247_v16, 0 }
 0x26c   :  { %v1337_v59 = vpop.eup %1336  ;;  %v1195_v15 = vpack.c.bf16 %v1012_v17, %v1010_v27  ;;  %v917_v10 = vmul.f32 0.6931472, %v1335_v49 }
 0x26d   :  { %v926_v6 = vmul.f32 0.6931472, %v1337_v59  ;;  %v1192_v8 = vpack.c.bf16 %v1013_v42, %v1011_v5 }
 0x26e   :  { %v923_v47 = vsel %vm922_vm15, %v920_v56, %v917_v10 }
 0x26f   :  { %v937_v53 = vsel %vm859_vm7, %v2059_v3, %v923_v47  ;;  %v932_v55 = vsel %vm931_vm8, %v929_v7, %v926_v6  ;;  %1193 = vmatprep.subr.msk.bf16.mxu1 %vm1191_vm0, %v1192_v8  ;;  %v1022_v3 = vld [vmem:[%s2167_s6] sm:$0x1]  ;;  %s1371_s6 = smov [#allocation4]  }
 0x270   :  { %v1014_v11 = vmul.f32 1.0050251, %v937_v53  ;;  %v938_v25 = vsel %vm860_vm10, %v2061_v26, %v932_v55  ;;  %1196 = vmatpush1.bf16.msk.msra.mxu1 %vm1194_vm9, %v1195_v15  ;;  %s1136_s27 = sshll.u32 %s1371_s6, 4  ;;  %s1137_s27 = int_to_ptr.vmem [resolvable:$true] %s1136_s27 }
 0x271   :  { %v1015_v58 = vmul.f32 1.0050251, %v938_v25  ;;  %s1346_s28 = scalar_lea.vmem %s1137_s27, 64  ;;  %p1351_p1 = scmp.lt.s32.totalorder %s1137_s27, %s1137_s27 }
 0x272   :  { %v1020_v60 = vsel %vm1008_vm3, %v1014_v11, 0.0  ;;  %p1347_p0 = scmp.ne.s32.totalorder %s1137_s27, %s1346_s28  ;;  %p1352_p2 = scmp.lt.s32.totalorder %s1346_s28, %s1346_s28 }
 0x273   :  { %v1021_v37 = vsel %vm1009_vm1, %v1015_v58, 0.0  ;;  %v1025_v9 = vpack.c.bf16 %v1020_v60, %v1020_v60 }
 0x274   :  { %v1026_v43 = vpack.c.bf16 %v1021_v37, %v1021_v37  ;;  %p1353_p3 = por %p1352_p2, %p1351_p1 }
 0x275   :  { %v1039_v45 = vsel %vm1037_vm2, %v1025_v9, 0 }
 0x276   :  { %1197 = vmatprep.subr.msk.bf16.mxu1 %vm1037_vm2, %v1026_v43  ;;  %p1354_p4 = pnand %p1353_p3, %p1347_p0 }
 0x277   :  { %1047 = vmatpush1.bf16.msra.mxu1 %v1039_v45 }
 0x27a   :  { %1198 = vmatmul.mubr.msk.bf16.vlgmr.msra.gmra.mrb[8].mxu1 %vm1033_vm4, %v1022_v3 }
 0x34d   :  { %v1078_v26 = vpop.f32.mrb[8].mxu1 }
 0x34e   :  { %v1079_v52 = vadd.f32 %v1078_v26, %v1031_v40  ;;  %v1080_v23 = vpop.f32.mrb[9].mxu1 }
 0x34f   :  { %v1081_v38 = vadd.f32 %v1080_v23, %v1031_v40  ;;  %v1082_v41 = vpop.f32.mrb[10].mxu1 }
 0x350   :  { %v1088_v12 = vmin.f32 %v1079_v52, 20.0  ;;  %v1083_v1 = vpop.f32.mrb[11].mxu1  ;;  %vm1086_vm6 = vcmp.gt.f32.partialorder %v1079_v52, 20.0 }
 0x351   :  { %v1089_v4 = vmin.f32 %v1081_v38, 20.0  ;;  %vm1087_vm12 = vcmp.gt.f32.partialorder %v1081_v38, 20.0 }
 0x352   :  { %v1090_v29 = vmul.f32 1.442695, %v1088_v12 }
 0x353   :  { %v1092_v24 = vmul.f32 1.442695, %v1089_v4 }
 0x354   :  { %1338 = vpow2.f32 %v1090_v29 }
 0x355   :  { %1340 = vpow2.f32 %v1092_v24 }
 0x35e   :  { %v1339_v36 = vpop.eup %1338 }
 0x35f   :  { %v1341_v31 = vpop.eup %1340  ;;  %v1094_v34 = vadd.f32 1.0, %v1339_v36  ;;  %v1097_v0 = vmul.f32 -0.5, %v1339_v36  ;;  %v1100_v30 = vand.u32 2147483647, %v1339_v36 }
 0x360   :  { %v1103_v32 = vadd.f32 1.0, %v1341_v31  ;;  %v1106_v63 = vmul.f32 -0.5, %v1341_v31  ;;  %v1109_v28 = vand.u32 2147483647, %v1341_v31 }
 0x361   :  { %1342 = vlog2.f32 %v1094_v34  ;;  %v1098_v46 = vadd.f32 1.0, %v1097_v0  ;;  %vm1101_vm5 = vcmp.lt.f32.partialorder %v1100_v30, 0.0004427343 }
 0x362   :  { %1344 = vlog2.f32 %v1103_v32  ;;  %v1107_v19 = vadd.f32 1.0, %v1106_v63  ;;  %vm1110_vm11 = vcmp.lt.f32.partialorder %v1109_v28, 0.0004427343 }
 0x363   :  { %v1099_v61 = vmul.f32 %v1339_v36, %v1098_v46 }
 0x364   :  { %v1108_v13 = vmul.f32 %v1341_v31, %v1107_v19 }
 0x36b   :  { %v1343_v48 = vpop.eup %1342 }
 0x36c   :  { %v1345_v57 = vpop.eup %1344  ;;  %v1096_v2 = vmul.f32 0.6931472, %v1343_v48 }
 0x36d   :  { %v1105_v50 = vmul.f32 0.6931472, %v1345_v57 }
 0x36e   :  { %v1102_v51 = vsel %vm1101_vm5, %v1099_v61, %v1096_v2 }
 0x36f   :  { %v1111_v21 = vsel %vm1110_vm11, %v1108_v13, %v1105_v50  ;;  %v1112_v33 = vsel %vm1086_vm6, %v1079_v52, %v1102_v51 }
 0x370   :  { %v1113_v54 = vsel %vm1087_vm12, %v1081_v38, %v1111_v21  ;;  %v1114_v35 = vadd.f32 1e-06, %v1112_v33 }
 0x371   :  { %v1115_v20 = vadd.f32 1e-06, %v1113_v54 }
 0x372   :  { %v1116_v14 = vsel %vm1085_vm13, %v1079_v52, %v1114_v35 }
 0x373   :  { %v1117_v27 = vsel %vm1085_vm13, %v1081_v38, %v1115_v20 }
 0x374   :  { %v1120_v17 = vcombine.low %v1116_v14, %v1117_v27 }
 0x376   :  { %1199 = vst.sshfl [vmem:[#allocation4] sm:$0x33 pattern:$0x76325410] %v1120_v17 }
 0x377   :  { %1357 = shalt.err (!%p1354_p4)
}
 0x378   :  { %s1358_s9 = scalar_lea.hbm %s2169_s8, 64 }
 0x379   :  { %p1359_p5 = scmp.ne.s32.totalorder %s2169_s8, %s1358_s9  ;;  %p1362_p6 = scmp.lt.u32.totalorder %s1358_s9, %s2169_s8 }
 0x37b   :  { %p1364_p7 = pnand %p1362_p6, %p1359_p5 }
 0x37d   :  { %1367 = shalt.err (!%p1364_p7)
}
 0x37e   :  { %1139 = dma.vmem_to_hbm [thread:$0]  %s1137_s27, 64, %s2169_s8, [#allocation5]  }
 0x37f   :  { %1368 = dma.done.wait [#allocation5], 64  }
 0x380   :  { %1369 = vsyncadd [#allocation5], 4294967232 }
 0x381   :  { %1143 = vsyncpa [#allocation5], 1 }

</bundles_post_ra>
